<compile_context>
chip_gen: v6e
topology: v6e:2x2x1
jax: 0.10.0
libtpu: 0.0.40
codegen_flags: <defaults>
</compile_context>

<pallas_src>
import numpy as np
import jax
import jax.numpy as jnp
from jax import lax
from jax.experimental import pallas as pl
from jax.experimental.pallas import tpu as pltpu


# ----------------------------------------------------------------------------
# ConvTranspose1d as one Pallas kernel (NCL layout, L on lanes)
# ----------------------------------------------------------------------------
def convtranspose1d_ncl(x_ncl, weight, bias, *, sub_k, stride, padding, out_dtype):
    """PyTorch-semantics ConvTranspose1d with kernel K = sub_k * stride.

    x_ncl: (B, Cin, L); weight: (Cin, Cout, K) (PyTorch layout); bias: (Cout,).
    Returns (B, Cout, L_final), L_final = (L-1)*stride - 2*padding + K.
    """
    B, Cin, L = x_ncl.shape
    Cout = weight.shape[1]
    S = stride
    K = sub_k * S
    assert weight.shape[2] == K, (weight.shape, K)
    Cp = S * Cout                                    # residues packed on sublanes
    l_pad = L + 2 * (sub_k - 1)
    l_out = L + sub_k - 1
    L_final = (L - 1) * S - 2 * padding + K

    # Sub-pixel decomposition: kernel index k = q*S + r; tap t = sub_k-1-q.
    # W_t[r*Cout + co, ci] = weight[ci, co, (sub_k-1-t)*S + r]
    w4 = weight.reshape(Cin, Cout, sub_k, S)                     # [ci, co, q, r]
    w4 = jnp.flip(w4, axis=2)                                    # q -> tap t
    w_packed = jnp.transpose(w4, (2, 3, 1, 0)).reshape(sub_k, Cp, Cin)
    bias_c = jnp.tile(bias, S).reshape(Cp, 1).astype(jnp.float32)

    # stride == 1 (stem): fold the crop into the kernel's output slice.
    if S == 1:
        col0, n_keep = padding, L_final
    else:
        col0, n_keep = 0, l_out

    xp = jnp.pad(x_ncl, ((0, 0), (0, 0), (sub_k - 1, sub_k - 1))).astype(jnp.bfloat16)

    def kernel(x_ref, w_ref, b_ref, o_ref):
        # x_ref: (1, Cin, l_pad) bf16   w_ref: (sub_k, Cp, Cin) bf16
        # b_ref: (Cp, 1) f32            o_ref: (1, Cp, n_keep)
        xv = x_ref[0]
        acc = None
        for t in range(sub_k):                                   # static, tiny
            p = jnp.dot(w_ref[t], xv, preferred_element_type=jnp.float32)
            p = p[:, t + col0:t + col0 + n_keep]                 # vreg lane shift
            acc = p if acc is None else acc + p
        o_ref[0] = (acc + b_ref[...]).astype(o_ref.dtype)

    out_bytes = 2 if out_dtype == jnp.bfloat16 else 4
    cost = pl.CostEstimate(
        flops=2 * B * sub_k * Cp * Cin * l_pad,
        transcendentals=0,
        bytes_accessed=(B * Cin * l_pad * 2 + sub_k * Cp * Cin * 2 + Cp * 4
                        + B * Cp * n_keep * out_bytes),
    )
    # TODO(synk): for very long L add an L-tile grid axis with a (sub_k-1)-wide
    # halo (pl.Element windows or manual DMA); full-L blocks are the maximal
    # tile and tiny at these channel counts but would not fit v7x VMEM beyond
    # a few hundred thousand samples.
    y = pl.pallas_call(
        kernel,
        out_shape=jax.ShapeDtypeStruct((B, Cp, n_keep), out_dtype),
        grid=(B,),
        in_specs=[
            pl.BlockSpec((1, Cin, l_pad), lambda b: (b, 0, 0)),
            pl.BlockSpec((sub_k, Cp, Cin), lambda b: (0, 0, 0)),
            pl.BlockSpec((Cp, 1), lambda b: (0, 0)),
        ],
        out_specs=pl.BlockSpec((1, Cp, n_keep), lambda b: (b, 0, 0)),
        compiler_params=pltpu.CompilerParams(dimension_semantics=("parallel",)),
        cost_estimate=cost,
    )(xp, w_packed.astype(jnp.bfloat16), bias_c)

    if S == 1:
        return y                                                 # already cropped
    # Un-interleave residues + crop: reshape is free; transpose+slice fuse into
    # a single XLA copy pass over this layer's output.
    y = y.reshape(B, S, Cout, n_keep)
    y = jnp.transpose(y, (0, 2, 3, 1)).reshape(B, Cout, n_keep * S)
    return y[:, :, padding:padding + L_final]


# ----------------------------------------------------------------------------
# Fused ResBlock1D stack: depth x [ReLU -> conv3 -> ReLU -> conv1 -> +res]
# in one pallas_call, intermediates never leave VMEM, no scratch buffers.
# ----------------------------------------------------------------------------
def resblock_stack(x_ncl, res_params):
    """x_ncl: (B, W, L) -> (B, W, L), applying `depth` residual blocks."""
    B, W, L = x_ncl.shape
    depth = len(res_params)
    # Pack weights: w1 per (block, tap) as (Cout, Cin); w2 as (Cout, Cin).
    w1 = jnp.stack([jnp.transpose(p["w1"], (2, 0, 1)) for p in res_params])   # (depth,3,W,W)
    b1 = jnp.stack([p["b1"].reshape(W, 1) for p in res_params])               # (depth,W,1)
    w2 = jnp.stack([p["w2"][:, :, 0] for p in res_params])                    # (depth,W,W)
    b2 = jnp.stack([p["b2"].reshape(W, 1) for p in res_params])               # (depth,W,1)

    def kernel(x_ref, w1_ref, b1_ref, w2_ref, b2_ref, o_ref):
        Wc, Lc = x_ref.shape[1], x_ref.shape[2]
        zcol = jnp.zeros((Wc, 1), jnp.float32)
        x0 = x_ref[0].astype(jnp.float32)            # running residual in f32

        def body(d, x):
            rx = jnp.maximum(x, 0.0).astype(jnp.bfloat16)        # bf16 MXU operand
            w1d = w1_ref[d]                                      # (3, W, W)
            p0 = jnp.dot(w1d[0], rx, preferred_element_type=jnp.float32)
            p1 = jnp.dot(w1d[1], rx, preferred_element_type=jnp.float32)
            p2 = jnp.dot(w1d[2], rx, preferred_element_type=jnp.float32)
            # 3-tap conv (pad=1): h[:, l] = p0[:, l-1] + p1[:, l] + p2[:, l+1]
            # Shifts happen on f32 *values* (lane shifts in vregs): no halo
            # scratch to zero and no sublane-misaligned VMEM re-reads.
            h = p1 + b1_ref[d]
            h = h + jnp.concatenate([zcol, p0[:, :Lc - 1]], axis=1)
            h = h + jnp.concatenate([p2[:, 1:], zcol], axis=1)
            rh = jnp.maximum(h, 0.0).astype(jnp.bfloat16)
            h2 = jnp.dot(w2_ref[d], rh, preferred_element_type=jnp.float32) + b2_ref[d]
            return x + h2

        xf = lax.fori_loop(0, depth, body, x0, unroll=True)
        o_ref[0] = xf.astype(o_ref.dtype)

    cost = pl.CostEstimate(
        flops=2 * B * depth * 4 * W * W * L,
        transcendentals=0,
        bytes_accessed=2 * B * W * L * 2 + depth * 4 * W * W * 2 + depth * 2 * W * 4,
    )
    # TODO(synk): for very long sequences on v7x (64 MiB VMEM) add an L-tile
    # grid axis with a depth-deep halo; with no scratch and bf16 HBM blocks the
    # current full-L design already fits far longer L than the previous version.
    return pl.pallas_call(
        kernel,
        out_shape=jax.ShapeDtypeStruct((B, W, L), jnp.bfloat16),
        grid=(B,),
        in_specs=[
            pl.BlockSpec((1, W, L), lambda b: (b, 0, 0)),
            pl.BlockSpec((depth, 3, W, W), lambda b: (0, 0, 0, 0)),
            pl.BlockSpec((depth, W, 1), lambda b: (0, 0, 0)),
            pl.BlockSpec((depth, W, W), lambda b: (0, 0, 0)),
            pl.BlockSpec((depth, W, 1), lambda b: (0, 0, 0)),
        ],
        out_specs=pl.BlockSpec((1, W, L), lambda b: (b, 0, 0)),
        compiler_params=pltpu.CompilerParams(dimension_semantics=("parallel",)),
        cost_estimate=cost,
    )(x_ncl.astype(jnp.bfloat16), w1.astype(jnp.bfloat16), b1.astype(jnp.float32),
      w2.astype(jnp.bfloat16), b2.astype(jnp.float32))


# ----------------------------------------------------------------------------
# Decoder: parameters + forward
# ----------------------------------------------------------------------------
def init_decoder_params(key, channels, codebook_dim, layers, ksz, stride, width, depth):
    K = stride * ksz
    keys = iter(jax.random.split(key, 2 + layers * (4 * depth + 2)))

    def u(shape, fan):
        bound = 1.0 / np.sqrt(fan)
        return jax.random.uniform(next(keys), shape, jnp.float32, -bound, bound)

    params = {
        "stem_w": u((codebook_dim, width, 3), codebook_dim * 3),   # ConvTranspose1d
        "stem_b": u((width,), codebook_dim * 3),
        "layers": [],
    }
    for i in range(layers):
        out_ch = channels if i == layers - 1 else width
        res = []
        for _ in range(depth):
            res.append({
                "w1": u((width, width, 3), width * 3), "b1": u((width,), width * 3),
                "w2": u((width, width, 1), width), "b2": u((width,), width),
            })
        params["layers"].append({
            "res": res,
            "up_w": u((width, out_ch, K), width * K),              # ConvTranspose1d
            "up_b": u((out_ch,), width * K),
        })
    return params


def decoder_forward(x_ncl, params, ksz, stride):
    """x_ncl: (B, codebook_dim, L) -> (B, channels, L * stride**layers), NCL."""
    # stem: ConvTranspose1d(codebook_dim, width, 3, 1, 1)
    x = convtranspose1d_ncl(x_ncl, params["stem_w"], params["stem_b"],
                            sub_k=3, stride=1, padding=1, out_dtype=jnp.bfloat16)
    P = stride // ksz
    n_layers = len(params["layers"])
    for i, lyr in enumerate(params["layers"]):
        x = resblock_stack(x, lyr["res"])                          # fused ResBlock1D
        last = i == n_layers - 1
        # ConvTranspose1d(width, out_ch, stride*ksz, stride, stride//ksz)
        x = convtranspose1d_ncl(x, lyr["up_w"], lyr["up_b"],
                                sub_k=ksz, stride=stride, padding=P,
                                out_dtype=jnp.float32 if last else jnp.bfloat16)
    return x


# ----------------------------------------------------------------------------
# Pure-numpy reference (validation only)
# ----------------------------------------------------------------------------
def _ref_conv1d(x, w, b, pad):           # x (B,Cin,L), w (Cout,Cin,K)
    B, Cin, L = x.shape
    Cout, _, K = w.shape
    xp = np.pad(x, ((0, 0), (0, 0), (pad, pad)))
    Lout = L + 2 * pad - K + 1
    out = np.zeros((B, Cout, Lout), np.float64)
    for t in range(Lout):
        for k in range(K):
            out[:, :, t] += np.einsum("bc,dc->bd", xp[:, :, t + k], w[:, :, k])
    return out + b[None, :, None]


def _ref_convtranspose1d(x, w, b, S, P):  # x (B,Cin,L), w (Cin,Cout,K)
    B, Cin, L = x.shape
    _, Cout, K = w.shape
    out = np.zeros((B, Cout, (L - 1) * S + K), np.float64)
    for i in range(L):
        for k in range(K):
            out[:, :, i * S + k] += np.einsum("bc,cd->bd", x[:, :, i], w[:, :, k])
    Lout = (L - 1) * S - 2 * P + K
    return out[:, :, P:P + Lout] + b[None, :, None]


def _ref_decoder(x, params, ksz, stride):
    g = lambda a: np.asarray(a, np.float64)
    relu = lambda a: np.maximum(a, 0.0)
    x = _ref_convtranspose1d(g(x), g(params["stem_w"]), g(params["stem_b"]), 1, 1)
    P = stride // ksz
    for lyr in params["layers"]:
        for rb in lyr["res"]:
            h = _ref_conv1d(relu(x), g(rb["w1"]), g(rb["b1"]), 1)
            h = _ref_conv1d(relu(h), g(rb["w2"]), g(rb["b2"]), 0)
            x = x + h
        x = _ref_convtranspose1d(x, g(lyr["up_w"]), g(lyr["up_b"]), stride, P)
    return x


# ----------------------------------------------------------------------------
if __name__ == "__main__":
    # Small config: Decoder(channels=4, codebook_dim=8, layers=2, kenel_size=2,
    #                       stride=2, width=32, depth=2)
    channels, codebook_dim, layers, ksz, stride, width, depth = 4, 8, 2, 2, 2, 32, 2

    key = jax.random.PRNGKey(0)
    kp, kx = jax.random.split(key)
    params = init_decoder_params(kp, channels, codebook_dim, layers, ksz, stride,
                                 width, depth)
    x = jax.random.normal(kx, (2, codebook_dim, 16), jnp.float32)   # NCL input

    fwd = jax.jit(lambda xx, pp: decoder_forward(xx, pp, ksz, stride))
    out = jax.block_until_ready(fwd(x, params))

    expected_shape = (2, channels, 16 * stride ** layers)
    assert out.shape == expected_shape, (out.shape, expected_shape)

    ref = _ref_decoder(np.asarray(x), params, ksz, stride)
    # bf16 MXU operands / bf16 inter-layer activations with f32 accumulation
    # -> relaxed tolerance vs the f64 reference.
    np.testing.assert_allclose(np.asarray(out, np.float64), ref, rtol=5e-2, atol=5e-2)

    print("KERNEL_OK")
</pallas_src>

<mosaic_0001>
module attributes {stable_mosaic.version = 11 : i64} {
  func.func @kernel(%arg0: i32, %arg1: memref<1x8x20xbf16, #tpu.memory_space<vmem>>, %arg2: memref<3x32x8xbf16, #tpu.memory_space<vmem>>, %arg3: memref<32x1xf32, #tpu.memory_space<vmem>>, %arg4: memref<1x32x16xbf16, #tpu.memory_space<vmem>>) attributes {dimension_semantics = [#tpu.dimension_semantics<parallel>], iteration_bounds = array<i64: 2>, scalar_prefetch = 0 : i64, scratch_operands = 0 : i64, tpu.core_type = #tpu.core_type<tc>, window_params = [{transform_indices = @transform_0, window_bounds = array<i64: 1, 8, 20>}, {pipeline_mode = #tpu.pipeline_mode<synchronous>, transform_indices = @transform_1, window_bounds = array<i64: 3, 32, 8>}, {pipeline_mode = #tpu.pipeline_mode<synchronous>, transform_indices = @transform_2, window_bounds = array<i64: 32, 1>}, {transform_indices = @transform_3, window_bounds = array<i64: 1, 32, 16>}]} {
    %c0 = arith.constant 0 : index
    %c0_0 = arith.constant 0 : index
    %c0_1 = arith.constant 0 : index
    %0 = vector.load %arg1[%c0, %c0_0, %c0_1] : memref<1x8x20xbf16, #tpu.memory_space<vmem>>, vector<1x8x20xbf16>
    %1 = vector.shape_cast %0 : vector<1x8x20xbf16> to vector<8x20xbf16>
    %c0_2 = arith.constant 0 : index
    %c0_3 = arith.constant 0 : index
    %c0_4 = arith.constant 0 : index
    %2 = vector.load %arg2[%c0_2, %c0_3, %c0_4] : memref<3x32x8xbf16, #tpu.memory_space<vmem>>, vector<1x32x8xbf16>
    %3 = vector.shape_cast %2 : vector<1x32x8xbf16> to vector<32x8xbf16>
    %cst = arith.constant dense<0.000000e+00> : vector<32x20xf32>
    %4 = tpu.matmul %3, %1, %cst {dimension_numbers = #tpu.dot_dimension_numbers<[1], [0], [0], [1], [0, 0, 1, 1], [], []>} : vector<32x8xbf16>, vector<8x20xbf16>, vector<32x20xf32> -> vector<32x20xf32>
    %5 = vector.extract_strided_slice %4 {offsets = [0, 1], sizes = [32, 16], strides = [1, 1]} : vector<32x20xf32> to vector<32x16xf32>
    %c1 = arith.constant 1 : index
    %c0_5 = arith.constant 0 : index
    %c0_6 = arith.constant 0 : index
    %6 = vector.load %arg2[%c1, %c0_5, %c0_6] : memref<3x32x8xbf16, #tpu.memory_space<vmem>>, vector<1x32x8xbf16>
    %7 = vector.shape_cast %6 : vector<1x32x8xbf16> to vector<32x8xbf16>
    %cst_7 = arith.constant dense<0.000000e+00> : vector<32x20xf32>
    %8 = tpu.matmul %7, %1, %cst_7 {dimension_numbers = #tpu.dot_dimension_numbers<[1], [0], [0], [1], [0, 0, 1, 1], [], []>} : vector<32x8xbf16>, vector<8x20xbf16>, vector<32x20xf32> -> vector<32x20xf32>
    %9 = vector.extract_strided_slice %8 {offsets = [0, 2], sizes = [32, 16], strides = [1, 1]} : vector<32x20xf32> to vector<32x16xf32>
    %10 = arith.addf %5, %9 : vector<32x16xf32>
    %c2 = arith.constant 2 : index
    %c0_8 = arith.constant 0 : index
    %c0_9 = arith.constant 0 : index
    %11 = vector.load %arg2[%c2, %c0_8, %c0_9] : memref<3x32x8xbf16, #tpu.memory_space<vmem>>, vector<1x32x8xbf16>
    %12 = vector.shape_cast %11 : vector<1x32x8xbf16> to vector<32x8xbf16>
    %cst_10 = arith.constant dense<0.000000e+00> : vector<32x20xf32>
    %13 = tpu.matmul %12, %1, %cst_10 {dimension_numbers = #tpu.dot_dimension_numbers<[1], [0], [0], [1], [0, 0, 1, 1], [], []>} : vector<32x8xbf16>, vector<8x20xbf16>, vector<32x20xf32> -> vector<32x20xf32>
    %14 = vector.extract_strided_slice %13 {offsets = [0, 3], sizes = [32, 16], strides = [1, 1]} : vector<32x20xf32> to vector<32x16xf32>
    %15 = arith.addf %10, %14 : vector<32x16xf32>
    %c0_11 = arith.constant 0 : index
    %c0_12 = arith.constant 0 : index
    %16 = vector.load %arg3[%c0_11, %c0_12] : memref<32x1xf32, #tpu.memory_space<vmem>>, vector<32x1xf32>
    %17 = vector.broadcast %16 : vector<32x1xf32> to vector<32x16xf32>
    %18 = arith.addf %15, %17 : vector<32x16xf32>
    %19 = arith.truncf %18 : vector<32x16xf32> to vector<32x16xbf16>
    %c0_13 = arith.constant 0 : index
    %c0_14 = arith.constant 0 : index
    %c0_15 = arith.constant 0 : index
    %20 = vector.load %arg4[%c0_13, %c0_14, %c0_15] : memref<1x32x16xbf16, #tpu.memory_space<vmem>>, vector<1x32x16xbf16>
    %21 = vector.shape_cast %20 : vector<1x32x16xbf16> to vector<32x16xbf16>
    %22 = vector.shape_cast %19 : vector<32x16xbf16> to vector<1x32x16xbf16>
    tpu.vector_store %arg4[%c0_13, %c0_14, %c0_15], %22 {strides = array<i32>} : memref<1x32x16xbf16, #tpu.memory_space<vmem>>, vector<1x32x16xbf16>,
    return
  }
  func.func @transform_0(%arg0: i32) -> (i32, i32, i32) {
    %c0_i32 = arith.constant 0 : i32
    %c0_i32_0 = arith.constant 0 : i32
    %c0_i32_1 = arith.constant 0 : i32
    return %arg0, %c0_i32, %c0_i32_0 : i32, i32, i32
  }
  func.func @transform_1(%arg0: i32) -> (i32, i32, i32) {
    %c0_i32 = arith.constant 0 : i32
    %c0_i32_0 = arith.constant 0 : i32
    %c0_i32_1 = arith.constant 0 : i32
    %c0_i32_2 = arith.constant 0 : i32
    return %c0_i32, %c0_i32_0, %c0_i32_1 : i32, i32, i32
  }
  func.func @transform_2(%arg0: i32) -> (i32, i32) {
    %c0_i32 = arith.constant 0 : i32
    %c0_i32_0 = arith.constant 0 : i32
    %c0_i32_1 = arith.constant 0 : i32
    return %c0_i32, %c0_i32_0 : i32, i32
  }
  func.func @transform_3(%arg0: i32) -> (i32, i32, i32) {
    %c0_i32 = arith.constant 0 : i32
    %c0_i32_0 = arith.constant 0 : i32
    %c0_i32_1 = arith.constant 0 : i32
    return %arg0, %c0_i32, %c0_i32_0 : i32, i32, i32
  }
}

module attributes {stable_mosaic.version = 11 : i64} {
  func.func @kernel(%arg0: i32, %arg1: memref<1x32x16xbf16, #tpu.memory_space<vmem>>, %arg2: memref<2x3x32x32xbf16, #tpu.memory_space<vmem>>, %arg3: memref<2x32x1xf32, #tpu.memory_space<vmem>>, %arg4: memref<2x32x32xbf16, #tpu.memory_space<vmem>>, %arg5: memref<2x32x1xf32, #tpu.memory_space<vmem>>, %arg6: memref<1x32x16xbf16, #tpu.memory_space<vmem>>) attributes {dimension_semantics = [#tpu.dimension_semantics<parallel>], iteration_bounds = array<i64: 2>, scalar_prefetch = 0 : i64, scratch_operands = 0 : i64, tpu.core_type = #tpu.core_type<tc>, window_params = [{transform_indices = @transform_0, window_bounds = array<i64: 1, 32, 16>}, {pipeline_mode = #tpu.pipeline_mode<synchronous>, transform_indices = @transform_1, window_bounds = array<i64: 2, 3, 32, 32>}, {pipeline_mode = #tpu.pipeline_mode<synchronous>, transform_indices = @transform_2, window_bounds = array<i64: 2, 32, 1>}, {pipeline_mode = #tpu.pipeline_mode<synchronous>, transform_indices = @transform_3, window_bounds = array<i64: 2, 32, 32>}, {pipeline_mode = #tpu.pipeline_mode<synchronous>, transform_indices = @transform_4, window_bounds = array<i64: 2, 32, 1>}, {transform_indices = @transform_5, window_bounds = array<i64: 1, 32, 16>}]} {
    %cst = arith.constant 0.000000e+00 : f32
    %0 = vector.broadcast %cst : f32 to vector<32x1xf32>
    %c0 = arith.constant 0 : index
    %c0_0 = arith.constant 0 : index
    %c0_1 = arith.constant 0 : index
    %1 = vector.load %arg1[%c0, %c0_0, %c0_1] : memref<1x32x16xbf16, #tpu.memory_space<vmem>>, vector<1x32x16xbf16>
    %2 = vector.shape_cast %1 : vector<1x32x16xbf16> to vector<32x16xbf16>
    %3 = arith.extf %2 : vector<32x16xbf16> to vector<32x16xf32>
    %c0_i32 = arith.constant 0 : i32
    %cst_2 = arith.constant 0.000000e+00 : f32
    %4 = vector.broadcast %cst_2 : f32 to vector<32x16xf32>
    %5 = arith.maximumf %3, %4 : vector<32x16xf32>
    %6 = arith.truncf %5 : vector<32x16xf32> to vector<32x16xbf16>
    %7 = arith.index_cast %c0_i32 : i32 to index
    %c0_3 = arith.constant 0 : index
    %c0_4 = arith.constant 0 : index
    %c0_5 = arith.constant 0 : index
    %8 = vector.load %arg2[%7, %c0_3, %c0_4, %c0_5] : memref<2x3x32x32xbf16, #tpu.memory_space<vmem>>, vector<1x3x32x32xbf16>
    %9 = vector.shape_cast %8 : vector<1x3x32x32xbf16> to vector<3x32x32xbf16>
    %10 = vector.extract_strided_slice %9 {offsets = [0, 0, 0], sizes = [1, 32, 32], strides = [1, 1, 1]} : vector<3x32x32xbf16> to vector<1x32x32xbf16>
    %11 = vector.shape_cast %10 : vector<1x32x32xbf16> to vector<32x32xbf16>
    %cst_6 = arith.constant dense<0.000000e+00> : vector<32x16xf32>
    %12 = tpu.matmul %11, %6, %cst_6 {dimension_numbers = #tpu.dot_dimension_numbers<[1], [0], [0], [1], [0, 0, 1, 1], [], []>} : vector<32x32xbf16>, vector<32x16xbf16>, vector<32x16xf32> -> vector<32x16xf32>
    %13 = vector.extract_strided_slice %9 {offsets = [1, 0, 0], sizes = [1, 32, 32], strides = [1, 1, 1]} : vector<3x32x32xbf16> to vector<1x32x32xbf16>
    %14 = vector.shape_cast %13 : vector<1x32x32xbf16> to vector<32x32xbf16>
    %cst_7 = arith.constant dense<0.000000e+00> : vector<32x16xf32>
    %15 = tpu.matmul %14, %6, %cst_7 {dimension_numbers = #tpu.dot_dimension_numbers<[1], [0], [0], [1], [0, 0, 1, 1], [], []>} : vector<32x32xbf16>, vector<32x16xbf16>, vector<32x16xf32> -> vector<32x16xf32>
    %16 = vector.extract_strided_slice %9 {offsets = [2, 0, 0], sizes = [1, 32, 32], strides = [1, 1, 1]} : vector<3x32x32xbf16> to vector<1x32x32xbf16>
    %17 = vector.shape_cast %16 : vector<1x32x32xbf16> to vector<32x32xbf16>
    %cst_8 = arith.constant dense<0.000000e+00> : vector<32x16xf32>
    %18 = tpu.matmul %17, %6, %cst_8 {dimension_numbers = #tpu.dot_dimension_numbers<[1], [0], [0], [1], [0, 0, 1, 1], [], []>} : vector<32x32xbf16>, vector<32x16xbf16>, vector<32x16xf32> -> vector<32x16xf32>
    %19 = arith.index_cast %c0_i32 : i32 to index
    %c0_9 = arith.constant 0 : index
    %c0_10 = arith.constant 0 : index
    %20 = vector.load %arg3[%19, %c0_9, %c0_10] : memref<2x32x1xf32, #tpu.memory_space<vmem>>, vector<1x32x1xf32>
    %21 = vector.shape_cast %20 : vector<1x32x1xf32> to vector<32x1xf32>
    %22 = vector.broadcast %21 : vector<32x1xf32> to vector<32x16xf32>
    %23 = arith.addf %15, %22 : vector<32x16xf32>
    %24 = vector.extract_strided_slice %12 {offsets = [0, 0], sizes = [32, 15], strides = [1, 1]} : vector<32x16xf32> to vector<32x15xf32>
    %25 = tpu.concatenate %0, %24 in 1 : vector<32x1xf32>, vector<32x15xf32> -> vector<32x16xf32>
    %26 = arith.addf %23, %25 : vector<32x16xf32>
    %27 = vector.extract_strided_slice %18 {offsets = [0, 1], sizes = [32, 15], strides = [1, 1]} : vector<32x16xf32> to vector<32x15xf32>
    %28 = tpu.concatenate %27, %0 in 1 : vector<32x15xf32>, vector<32x1xf32> -> vector<32x16xf32>
    %29 = arith.addf %26, %28 : vector<32x16xf32>
    %cst_11 = arith.constant 0.000000e+00 : f32
    %30 = vector.broadcast %cst_11 : f32 to vector<32x16xf32>
    %31 = arith.maximumf %29, %30 : vector<32x16xf32>
    %32 = arith.truncf %31 : vector<32x16xf32> to vector<32x16xbf16>
    %33 = arith.index_cast %c0_i32 : i32 to index
    %c0_12 = arith.constant 0 : index
    %c0_13 = arith.constant 0 : index
    %34 = vector.load %arg4[%33, %c0_12, %c0_13] : memref<2x32x32xbf16, #tpu.memory_space<vmem>>, vector<1x32x32xbf16>
    %35 = vector.shape_cast %34 : vector<1x32x32xbf16> to vector<32x32xbf16>
    %cst_14 = arith.constant dense<0.000000e+00> : vector<32x16xf32>
    %36 = tpu.matmul %35, %32, %cst_14 {dimension_numbers = #tpu.dot_dimension_numbers<[1], [0], [0], [1], [0, 0, 1, 1], [], []>} : vector<32x32xbf16>, vector<32x16xbf16>, vector<32x16xf32> -> vector<32x16xf32>
    %37 = arith.index_cast %c0_i32 : i32 to index
    %c0_15 = arith.constant 0 : index
    %c0_16 = arith.constant 0 : index
    %38 = vector.load %arg5[%37, %c0_15, %c0_16] : memref<2x32x1xf32, #tpu.memory_space<vmem>>, vector<1x32x1xf32>
    %39 = vector.shape_cast %38 : vector<1x32x1xf32> to vector<32x1xf32>
    %40 = vector.broadcast %39 : vector<32x1xf32> to vector<32x16xf32>
    %41 = arith.addf %36, %40 : vector<32x16xf32>
    %42 = arith.addf %3, %41 : vector<32x16xf32>
    %c1_i32 = arith.constant 1 : i32
    %cst_17 = arith.constant 0.000000e+00 : f32
    %43 = vector.broadcast %cst_17 : f32 to vector<32x16xf32>
    %44 = arith.maximumf %42, %43 : vector<32x16xf32>
    %45 = arith.truncf %44 : vector<32x16xf32> to vector<32x16xbf16>
    %46 = arith.index_cast %c1_i32 : i32 to index
    %c0_18 = arith.constant 0 : index
    %c0_19 = arith.constant 0 : index
    %c0_20 = arith.constant 0 : index
    %47 = vector.load %arg2[%46, %c0_18, %c0_19, %c0_20] : memref<2x3x32x32xbf16, #tpu.memory_space<vmem>>, vector<1x3x32x32xbf16>
    %48 = vector.shape_cast %47 : vector<1x3x32x32xbf16> to vector<3x32x32xbf16>
    %49 = vector.extract_strided_slice %48 {offsets = [0, 0, 0], sizes = [1, 32, 32], strides = [1, 1, 1]} : vector<3x32x32xbf16> to vector<1x32x32xbf16>
    %50 = vector.shape_cast %49 : vector<1x32x32xbf16> to vector<32x32xbf16>
    %cst_21 = arith.constant dense<0.000000e+00> : vector<32x16xf32>
    %51 = tpu.matmul %50, %45, %cst_21 {dimension_numbers = #tpu.dot_dimension_numbers<[1], [0], [0], [1], [0, 0, 1, 1], [], []>} : vector<32x32xbf16>, vector<32x16xbf16>, vector<32x16xf32> -> vector<32x16xf32>
    %52 = vector.extract_strided_slice %48 {offsets = [1, 0, 0], sizes = [1, 32, 32], strides = [1, 1, 1]} : vector<3x32x32xbf16> to vector<1x32x32xbf16>
    %53 = vector.shape_cast %52 : vector<1x32x32xbf16> to vector<32x32xbf16>
    %cst_22 = arith.constant dense<0.000000e+00> : vector<32x16xf32>
    %54 = tpu.matmul %53, %45, %cst_22 {dimension_numbers = #tpu.dot_dimension_numbers<[1], [0], [0], [1], [0, 0, 1, 1], [], []>} : vector<32x32xbf16>, vector<32x16xbf16>, vector<32x16xf32> -> vector<32x16xf32>
    %55 = vector.extract_strided_slice %48 {offsets = [2, 0, 0], sizes = [1, 32, 32], strides = [1, 1, 1]} : vector<3x32x32xbf16> to vector<1x32x32xbf16>
    %56 = vector.shape_cast %55 : vector<1x32x32xbf16> to vector<32x32xbf16>
    %cst_23 = arith.constant dense<0.000000e+00> : vector<32x16xf32>
    %57 = tpu.matmul %56, %45, %cst_23 {dimension_numbers = #tpu.dot_dimension_numbers<[1], [0], [0], [1], [0, 0, 1, 1], [], []>} : vector<32x32xbf16>, vector<32x16xbf16>, vector<32x16xf32> -> vector<32x16xf32>
    %58 = arith.index_cast %c1_i32 : i32 to index
    %c0_24 = arith.constant 0 : index
    %c0_25 = arith.constant 0 : index
    %59 = vector.load %arg3[%58, %c0_24, %c0_25] : memref<2x32x1xf32, #tpu.memory_space<vmem>>, vector<1x32x1xf32>
    %60 = vector.shape_cast %59 : vector<1x32x1xf32> to vector<32x1xf32>
    %61 = vector.broadcast %60 : vector<32x1xf32> to vector<32x16xf32>
    %62 = arith.addf %54, %61 : vector<32x16xf32>
    %63 = vector.extract_strided_slice %51 {offsets = [0, 0], sizes = [32, 15], strides = [1, 1]} : vector<32x16xf32> to vector<32x15xf32>
    %64 = tpu.concatenate %0, %63 in 1 : vector<32x1xf32>, vector<32x15xf32> -> vector<32x16xf32>
    %65 = arith.addf %62, %64 : vector<32x16xf32>
    %66 = vector.extract_strided_slice %57 {offsets = [0, 1], sizes = [32, 15], strides = [1, 1]} : vector<32x16xf32> to vector<32x15xf32>
    %67 = tpu.concatenate %66, %0 in 1 : vector<32x15xf32>, vector<32x1xf32> -> vector<32x16xf32>
    %68 = arith.addf %65, %67 : vector<32x16xf32>
    %cst_26 = arith.constant 0.000000e+00 : f32
    %69 = vector.broadcast %cst_26 : f32 to vector<32x16xf32>
    %70 = arith.maximumf %68, %69 : vector<32x16xf32>
    %71 = arith.truncf %70 : vector<32x16xf32> to vector<32x16xbf16>
    %72 = arith.index_cast %c1_i32 : i32 to index
    %c0_27 = arith.constant 0 : index
    %c0_28 = arith.constant 0 : index
    %73 = vector.load %arg4[%72, %c0_27, %c0_28] : memref<2x32x32xbf16, #tpu.memory_space<vmem>>, vector<1x32x32xbf16>
    %74 = vector.shape_cast %73 : vector<1x32x32xbf16> to vector<32x32xbf16>
    %cst_29 = arith.constant dense<0.000000e+00> : vector<32x16xf32>
    %75 = tpu.matmul %74, %71, %cst_29 {dimension_numbers = #tpu.dot_dimension_numbers<[1], [0], [0], [1], [0, 0, 1, 1], [], []>} : vector<32x32xbf16>, vector<32x16xbf16>, vector<32x16xf32> -> vector<32x16xf32>
    %76 = arith.index_cast %c1_i32 : i32 to index
    %c0_30 = arith.constant 0 : index
    %c0_31 = arith.constant 0 : index
    %77 = vector.load %arg5[%76, %c0_30, %c0_31] : memref<2x32x1xf32, #tpu.memory_space<vmem>>, vector<1x32x1xf32>
    %78 = vector.shape_cast %77 : vector<1x32x1xf32> to vector<32x1xf32>
    %79 = vector.broadcast %78 : vector<32x1xf32> to vector<32x16xf32>
    %80 = arith.addf %75, %79 : vector<32x16xf32>
    %81 = arith.addf %42, %80 : vector<32x16xf32>
    %c2_i32 = arith.constant 2 : i32
    %82 = arith.truncf %81 : vector<32x16xf32> to vector<32x16xbf16>
    %c0_32 = arith.constant 0 : index
    %c0_33 = arith.constant 0 : index
    %c0_34 = arith.constant 0 : index
    %83 = vector.load %arg6[%c0_32, %c0_33, %c0_34] : memref<1x32x16xbf16, #tpu.memory_space<vmem>>, vector<1x32x16xbf16>
    %84 = vector.shape_cast %83 : vector<1x32x16xbf16> to vector<32x16xbf16>
    %85 = vector.shape_cast %82 : vector<32x16xbf16> to vector<1x32x16xbf16>
    tpu.vector_store %arg6[%c0_32, %c0_33, %c0_34], %85 {strides = array<i32>} : memref<1x32x16xbf16, #tpu.memory_space<vmem>>, vector<1x32x16xbf16>,
    return
  }
  func.func @transform_0(%arg0: i32) -> (i32, i32, i32) {
    %c0_i32 = arith.constant 0 : i32
    %c0_i32_0 = arith.constant 0 : i32
    %c0_i32_1 = arith.constant 0 : i32
    return %arg0, %c0_i32, %c0_i32_0 : i32, i32, i32
  }
  func.func @transform_1(%arg0: i32) -> (i32, i32, i32, i32) {
    %c0_i32 = arith.constant 0 : i32
    %c0_i32_0 = arith.constant 0 : i32
    %c0_i32_1 = arith.constant 0 : i32
    %c0_i32_2 = arith.constant 0 : i32
    %c0_i32_3 = arith.constant 0 : i32
    return %c0_i32, %c0_i32_0, %c0_i32_1, %c0_i32_2 : i32, i32, i32, i32
  }
  func.func @transform_2(%arg0: i32) -> (i32, i32, i32) {
    %c0_i32 = arith.constant 0 : i32
    %c0_i32_0 = arith.constant 0 : i32
    %c0_i32_1 = arith.constant 0 : i32
    %c0_i32_2 = arith.constant 0 : i32
    return %c0_i32, %c0_i32_0, %c0_i32_1 : i32, i32, i32
  }
  func.func @transform_3(%arg0: i32) -> (i32, i32, i32) {
    %c0_i32 = arith.constant 0 : i32
    %c0_i32_0 = arith.constant 0 : i32
    %c0_i32_1 = arith.constant 0 : i32
    %c0_i32_2 = arith.constant 0 : i32
    return %c0_i32, %c0_i32_0, %c0_i32_1 : i32, i32, i32
  }
  func.func @transform_4(%arg0: i32) -> (i32, i32, i32) {
    %c0_i32 = arith.constant 0 : i32
    %c0_i32_0 = arith.constant 0 : i32
    %c0_i32_1 = arith.constant 0 : i32
    %c0_i32_2 = arith.constant 0 : i32
    return %c0_i32, %c0_i32_0, %c0_i32_1 : i32, i32, i32
  }
  func.func @transform_5(%arg0: i32) -> (i32, i32, i32) {
    %c0_i32 = arith.constant 0 : i32
    %c0_i32_0 = arith.constant 0 : i32
    %c0_i32_1 = arith.constant 0 : i32
    return %arg0, %c0_i32, %c0_i32_0 : i32, i32, i32
  }
}

module attributes {stable_mosaic.version = 11 : i64} {
  func.func @kernel(%arg0: i32, %arg1: memref<1x32x18xbf16, #tpu.memory_space<vmem>>, %arg2: memref<2x64x32xbf16, #tpu.memory_space<vmem>>, %arg3: memref<64x1xf32, #tpu.memory_space<vmem>>, %arg4: memref<1x64x17xbf16, #tpu.memory_space<vmem>>) attributes {dimension_semantics = [#tpu.dimension_semantics<parallel>], iteration_bounds = array<i64: 2>, scalar_prefetch = 0 : i64, scratch_operands = 0 : i64, tpu.core_type = #tpu.core_type<tc>, window_params = [{transform_indices = @transform_0, window_bounds = array<i64: 1, 32, 18>}, {pipeline_mode = #tpu.pipeline_mode<synchronous>, transform_indices = @transform_1, window_bounds = array<i64: 2, 64, 32>}, {pipeline_mode = #tpu.pipeline_mode<synchronous>, transform_indices = @transform_2, window_bounds = array<i64: 64, 1>}, {transform_indices = @transform_3, window_bounds = array<i64: 1, 64, 17>}]} {
    %c0 = arith.constant 0 : index
    %c0_0 = arith.constant 0 : index
    %c0_1 = arith.constant 0 : index
    %0 = vector.load %arg1[%c0, %c0_0, %c0_1] : memref<1x32x18xbf16, #tpu.memory_space<vmem>>, vector<1x32x18xbf16>
    %1 = vector.shape_cast %0 : vector<1x32x18xbf16> to vector<32x18xbf16>
    %c0_2 = arith.constant 0 : index
    %c0_3 = arith.constant 0 : index
    %c0_4 = arith.constant 0 : index
    %2 = vector.load %arg2[%c0_2, %c0_3, %c0_4] : memref<2x64x32xbf16, #tpu.memory_space<vmem>>, vector<1x64x32xbf16>
    %3 = vector.shape_cast %2 : vector<1x64x32xbf16> to vector<64x32xbf16>
    %cst = arith.constant dense<0.000000e+00> : vector<64x18xf32>
    %4 = tpu.matmul %3, %1, %cst {dimension_numbers = #tpu.dot_dimension_numbers<[1], [0], [0], [1], [0, 0, 1, 1], [], []>} : vector<64x32xbf16>, vector<32x18xbf16>, vector<64x18xf32> -> vector<64x18xf32>
    %5 = vector.extract_strided_slice %4 {offsets = [0, 0], sizes = [64, 17], strides = [1, 1]} : vector<64x18xf32> to vector<64x17xf32>
    %c1 = arith.constant 1 : index
    %c0_5 = arith.constant 0 : index
    %c0_6 = arith.constant 0 : index
    %6 = vector.load %arg2[%c1, %c0_5, %c0_6] : memref<2x64x32xbf16, #tpu.memory_space<vmem>>, vector<1x64x32xbf16>
    %7 = vector.shape_cast %6 : vector<1x64x32xbf16> to vector<64x32xbf16>
    %cst_7 = arith.constant dense<0.000000e+00> : vector<64x18xf32>
    %8 = tpu.matmul %7, %1, %cst_7 {dimension_numbers = #tpu.dot_dimension_numbers<[1], [0], [0], [1], [0, 0, 1, 1], [], []>} : vector<64x32xbf16>, vector<32x18xbf16>, vector<64x18xf32> -> vector<64x18xf32>
    %9 = vector.extract_strided_slice %8 {offsets = [0, 1], sizes = [64, 17], strides = [1, 1]} : vector<64x18xf32> to vector<64x17xf32>
    %10 = arith.addf %5, %9 : vector<64x17xf32>
    %c0_8 = arith.constant 0 : index
    %c0_9 = arith.constant 0 : index
    %11 = vector.load %arg3[%c0_8, %c0_9] : memref<64x1xf32, #tpu.memory_space<vmem>>, vector<64x1xf32>
    %12 = vector.broadcast %11 : vector<64x1xf32> to vector<64x17xf32>
    %13 = arith.addf %10, %12 : vector<64x17xf32>
    %14 = arith.truncf %13 : vector<64x17xf32> to vector<64x17xbf16>
    %c0_10 = arith.constant 0 : index
    %c0_11 = arith.constant 0 : index
    %c0_12 = arith.constant 0 : index
    %15 = vector.load %arg4[%c0_10, %c0_11, %c0_12] : memref<1x64x17xbf16, #tpu.memory_space<vmem>>, vector<1x64x17xbf16>
    %16 = vector.shape_cast %15 : vector<1x64x17xbf16> to vector<64x17xbf16>
    %17 = vector.shape_cast %14 : vector<64x17xbf16> to vector<1x64x17xbf16>
    tpu.vector_store %arg4[%c0_10, %c0_11, %c0_12], %17 {strides = array<i32>} : memref<1x64x17xbf16, #tpu.memory_space<vmem>>, vector<1x64x17xbf16>,
    return
  }
  func.func @transform_0(%arg0: i32) -> (i32, i32, i32) {
    %c0_i32 = arith.constant 0 : i32
    %c0_i32_0 = arith.constant 0 : i32
    %c0_i32_1 = arith.constant 0 : i32
    return %arg0, %c0_i32, %c0_i32_0 : i32, i32, i32
  }
  func.func @transform_1(%arg0: i32) -> (i32, i32, i32) {
    %c0_i32 = arith.constant 0 : i32
    %c0_i32_0 = arith.constant 0 : i32
    %c0_i32_1 = arith.constant 0 : i32
    %c0_i32_2 = arith.constant 0 : i32
    return %c0_i32, %c0_i32_0, %c0_i32_1 : i32, i32, i32
  }
  func.func @transform_2(%arg0: i32) -> (i32, i32) {
    %c0_i32 = arith.constant 0 : i32
    %c0_i32_0 = arith.constant 0 : i32
    %c0_i32_1 = arith.constant 0 : i32
    return %c0_i32, %c0_i32_0 : i32, i32
  }
  func.func @transform_3(%arg0: i32) -> (i32, i32, i32) {
    %c0_i32 = arith.constant 0 : i32
    %c0_i32_0 = arith.constant 0 : i32
    %c0_i32_1 = arith.constant 0 : i32
    return %arg0, %c0_i32, %c0_i32_0 : i32, i32, i32
  }
}

module attributes {stable_mosaic.version = 11 : i64} {
  func.func @kernel(%arg0: i32, %arg1: memref<1x32x34xbf16, #tpu.memory_space<vmem>>, %arg2: memref<2x8x32xbf16, #tpu.memory_space<vmem>>, %arg3: memref<8x1xf32, #tpu.memory_space<vmem>>, %arg4: memref<1x8x33xf32, #tpu.memory_space<vmem>>) attributes {dimension_semantics = [#tpu.dimension_semantics<parallel>], iteration_bounds = array<i64: 2>, scalar_prefetch = 0 : i64, scratch_operands = 0 : i64, tpu.core_type = #tpu.core_type<tc>, window_params = [{transform_indices = @transform_0, window_bounds = array<i64: 1, 32, 34>}, {pipeline_mode = #tpu.pipeline_mode<synchronous>, transform_indices = @transform_1, window_bounds = array<i64: 2, 8, 32>}, {pipeline_mode = #tpu.pipeline_mode<synchronous>, transform_indices = @transform_2, window_bounds = array<i64: 8, 1>}, {transform_indices = @transform_3, window_bounds = array<i64: 1, 8, 33>}]} {
    %c0 = arith.constant 0 : index
    %c0_0 = arith.constant 0 : index
    %c0_1 = arith.constant 0 : index
    %0 = vector.load %arg1[%c0, %c0_0, %c0_1] : memref<1x32x34xbf16, #tpu.memory_space<vmem>>, vector<1x32x34xbf16>
    %1 = vector.shape_cast %0 : vector<1x32x34xbf16> to vector<32x34xbf16>
    %c0_2 = arith.constant 0 : index
    %c0_3 = arith.constant 0 : index
    %c0_4 = arith.constant 0 : index
    %2 = vector.load %arg2[%c0_2, %c0_3, %c0_4] : memref<2x8x32xbf16, #tpu.memory_space<vmem>>, vector<1x8x32xbf16>
    %3 = vector.shape_cast %2 : vector<1x8x32xbf16> to vector<8x32xbf16>
    %cst = arith.constant dense<0.000000e+00> : vector<8x34xf32>
    %4 = tpu.matmul %3, %1, %cst {dimension_numbers = #tpu.dot_dimension_numbers<[1], [0], [0], [1], [0, 0, 1, 1], [], []>} : vector<8x32xbf16>, vector<32x34xbf16>, vector<8x34xf32> -> vector<8x34xf32>
    %5 = vector.extract_strided_slice %4 {offsets = [0, 0], sizes = [8, 33], strides = [1, 1]} : vector<8x34xf32> to vector<8x33xf32>
    %c1 = arith.constant 1 : index
    %c0_5 = arith.constant 0 : index
    %c0_6 = arith.constant 0 : index
    %6 = vector.load %arg2[%c1, %c0_5, %c0_6] : memref<2x8x32xbf16, #tpu.memory_space<vmem>>, vector<1x8x32xbf16>
    %7 = vector.shape_cast %6 : vector<1x8x32xbf16> to vector<8x32xbf16>
    %cst_7 = arith.constant dense<0.000000e+00> : vector<8x34xf32>
    %8 = tpu.matmul %7, %1, %cst_7 {dimension_numbers = #tpu.dot_dimension_numbers<[1], [0], [0], [1], [0, 0, 1, 1], [], []>} : vector<8x32xbf16>, vector<32x34xbf16>, vector<8x34xf32> -> vector<8x34xf32>
    %9 = vector.extract_strided_slice %8 {offsets = [0, 1], sizes = [8, 33], strides = [1, 1]} : vector<8x34xf32> to vector<8x33xf32>
    %10 = arith.addf %5, %9 : vector<8x33xf32>
    %c0_8 = arith.constant 0 : index
    %c0_9 = arith.constant 0 : index
    %11 = vector.load %arg3[%c0_8, %c0_9] : memref<8x1xf32, #tpu.memory_space<vmem>>, vector<8x1xf32>
    %12 = vector.broadcast %11 : vector<8x1xf32> to vector<8x33xf32>
    %13 = arith.addf %10, %12 : vector<8x33xf32>
    %c0_10 = arith.constant 0 : index
    %c0_11 = arith.constant 0 : index
    %c0_12 = arith.constant 0 : index
    %14 = vector.load %arg4[%c0_10, %c0_11, %c0_12] : memref<1x8x33xf32, #tpu.memory_space<vmem>>, vector<1x8x33xf32>
    %15 = vector.shape_cast %14 : vector<1x8x33xf32> to vector<8x33xf32>
    %16 = vector.shape_cast %13 : vector<8x33xf32> to vector<1x8x33xf32>
    tpu.vector_store %arg4[%c0_10, %c0_11, %c0_12], %16 {strides = array<i32>} : memref<1x8x33xf32, #tpu.memory_space<vmem>>, vector<1x8x33xf32>,
    return
  }
  func.func @transform_0(%arg0: i32) -> (i32, i32, i32) {
    %c0_i32 = arith.constant 0 : i32
    %c0_i32_0 = arith.constant 0 : i32
    %c0_i32_1 = arith.constant 0 : i32
    return %arg0, %c0_i32, %c0_i32_0 : i32, i32, i32
  }
  func.func @transform_1(%arg0: i32) -> (i32, i32, i32) {
    %c0_i32 = arith.constant 0 : i32
    %c0_i32_0 = arith.constant 0 : i32
    %c0_i32_1 = arith.constant 0 : i32
    %c0_i32_2 = arith.constant 0 : i32
    return %c0_i32, %c0_i32_0, %c0_i32_1 : i32, i32, i32
  }
  func.func @transform_2(%arg0: i32) -> (i32, i32) {
    %c0_i32 = arith.constant 0 : i32
    %c0_i32_0 = arith.constant 0 : i32
    %c0_i32_1 = arith.constant 0 : i32
    return %c0_i32, %c0_i32_0 : i32, i32
  }
  func.func @transform_3(%arg0: i32) -> (i32, i32, i32) {
    %c0_i32 = arith.constant 0 : i32
    %c0_i32_0 = arith.constant 0 : i32
    %c0_i32_1 = arith.constant 0 : i32
    return %arg0, %c0_i32, %c0_i32_0 : i32, i32, i32
  }
}

module attributes {stable_mosaic.version = 11 : i64} {
  func.func @kernel(%arg0: i32, %arg1: memref<1x32x32xbf16, #tpu.memory_space<vmem>>, %arg2: memref<2x3x32x32xbf16, #tpu.memory_space<vmem>>, %arg3: memref<2x32x1xf32, #tpu.memory_space<vmem>>, %arg4: memref<2x32x32xbf16, #tpu.memory_space<vmem>>, %arg5: memref<2x32x1xf32, #tpu.memory_space<vmem>>, %arg6: memref<1x32x32xbf16, #tpu.memory_space<vmem>>) attributes {dimension_semantics = [#tpu.dimension_semantics<parallel>], iteration_bounds = array<i64: 2>, scalar_prefetch = 0 : i64, scratch_operands = 0 : i64, tpu.core_type = #tpu.core_type<tc>, window_params = [{transform_indices = @transform_0, window_bounds = array<i64: 1, 32, 32>}, {pipeline_mode = #tpu.pipeline_mode<synchronous>, transform_indices = @transform_1, window_bounds = array<i64: 2, 3, 32, 32>}, {pipeline_mode = #tpu.pipeline_mode<synchronous>, transform_indices = @transform_2, window_bounds = array<i64: 2, 32, 1>}, {pipeline_mode = #tpu.pipeline_mode<synchronous>, transform_indices = @transform_3, window_bounds = array<i64: 2, 32, 32>}, {pipeline_mode = #tpu.pipeline_mode<synchronous>, transform_indices = @transform_4, window_bounds = array<i64: 2, 32, 1>}, {transform_indices = @transform_5, window_bounds = array<i64: 1, 32, 32>}]} {
    %cst = arith.constant 0.000000e+00 : f32
    %0 = vector.broadcast %cst : f32 to vector<32x1xf32>
    %c0 = arith.constant 0 : index
    %c0_0 = arith.constant 0 : index
    %c0_1 = arith.constant 0 : index
    %1 = vector.load %arg1[%c0, %c0_0, %c0_1] : memref<1x32x32xbf16, #tpu.memory_space<vmem>>, vector<1x32x32xbf16>
    %2 = vector.shape_cast %1 : vector<1x32x32xbf16> to vector<32x32xbf16>
    %3 = arith.extf %2 : vector<32x32xbf16> to vector<32x32xf32>
    %c0_i32 = arith.constant 0 : i32
    %cst_2 = arith.constant 0.000000e+00 : f32
    %4 = vector.broadcast %cst_2 : f32 to vector<32x32xf32>
    %5 = arith.maximumf %3, %4 : vector<32x32xf32>
    %6 = arith.truncf %5 : vector<32x32xf32> to vector<32x32xbf16>
    %7 = arith.index_cast %c0_i32 : i32 to index
    %c0_3 = arith.constant 0 : index
    %c0_4 = arith.constant 0 : index
    %c0_5 = arith.constant 0 : index
    %8 = vector.load %arg2[%7, %c0_3, %c0_4, %c0_5] : memref<2x3x32x32xbf16, #tpu.memory_space<vmem>>, vector<1x3x32x32xbf16>
    %9 = vector.shape_cast %8 : vector<1x3x32x32xbf16> to vector<3x32x32xbf16>
    %10 = vector.extract_strided_slice %9 {offsets = [0, 0, 0], sizes = [1, 32, 32], strides = [1, 1, 1]} : vector<3x32x32xbf16> to vector<1x32x32xbf16>
    %11 = vector.shape_cast %10 : vector<1x32x32xbf16> to vector<32x32xbf16>
    %cst_6 = arith.constant dense<0.000000e+00> : vector<32x32xf32>
    %12 = tpu.matmul %11, %6, %cst_6 {dimension_numbers = #tpu.dot_dimension_numbers<[1], [0], [0], [1], [0, 0, 1, 1], [], []>} : vector<32x32xbf16>, vector<32x32xbf16>, vector<32x32xf32> -> vector<32x32xf32>
    %13 = vector.extract_strided_slice %9 {offsets = [1, 0, 0], sizes = [1, 32, 32], strides = [1, 1, 1]} : vector<3x32x32xbf16> to vector<1x32x32xbf16>
    %14 = vector.shape_cast %13 : vector<1x32x32xbf16> to vector<32x32xbf16>
    %cst_7 = arith.constant dense<0.000000e+00> : vector<32x32xf32>
    %15 = tpu.matmul %14, %6, %cst_7 {dimension_numbers = #tpu.dot_dimension_numbers<[1], [0], [0], [1], [0, 0, 1, 1], [], []>} : vector<32x32xbf16>, vector<32x32xbf16>, vector<32x32xf32> -> vector<32x32xf32>
    %16 = vector.extract_strided_slice %9 {offsets = [2, 0, 0], sizes = [1, 32, 32], strides = [1, 1, 1]} : vector<3x32x32xbf16> to vector<1x32x32xbf16>
    %17 = vector.shape_cast %16 : vector<1x32x32xbf16> to vector<32x32xbf16>
    %cst_8 = arith.constant dense<0.000000e+00> : vector<32x32xf32>
    %18 = tpu.matmul %17, %6, %cst_8 {dimension_numbers = #tpu.dot_dimension_numbers<[1], [0], [0], [1], [0, 0, 1, 1], [], []>} : vector<32x32xbf16>, vector<32x32xbf16>, vector<32x32xf32> -> vector<32x32xf32>
    %19 = arith.index_cast %c0_i32 : i32 to index
    %c0_9 = arith.constant 0 : index
    %c0_10 = arith.constant 0 : index
    %20 = vector.load %arg3[%19, %c0_9, %c0_10] : memref<2x32x1xf32, #tpu.memory_space<vmem>>, vector<1x32x1xf32>
    %21 = vector.shape_cast %20 : vector<1x32x1xf32> to vector<32x1xf32>
    %22 = vector.broadcast %21 : vector<32x1xf32> to vector<32x32xf32>
    %23 = arith.addf %15, %22 : vector<32x32xf32>
    %24 = vector.extract_strided_slice %12 {offsets = [0, 0], sizes = [32, 31], strides = [1, 1]} : vector<32x32xf32> to vector<32x31xf32>
    %25 = tpu.concatenate %0, %24 in 1 : vector<32x1xf32>, vector<32x31xf32> -> vector<32x32xf32>
    %26 = arith.addf %23, %25 : vector<32x32xf32>
    %27 = vector.extract_strided_slice %18 {offsets = [0, 1], sizes = [32, 31], strides = [1, 1]} : vector<32x32xf32> to vector<32x31xf32>
    %28 = tpu.concatenate %27, %0 in 1 : vector<32x31xf32>, vector<32x1xf32> -> vector<32x32xf32>
    %29 = arith.addf %26, %28 : vector<32x32xf32>
    %cst_11 = arith.constant 0.000000e+00 : f32
    %30 = vector.broadcast %cst_11 : f32 to vector<32x32xf32>
    %31 = arith.maximumf %29, %30 : vector<32x32xf32>
    %32 = arith.truncf %31 : vector<32x32xf32> to vector<32x32xbf16>
    %33 = arith.index_cast %c0_i32 : i32 to index
    %c0_12 = arith.constant 0 : index
    %c0_13 = arith.constant 0 : index
    %34 = vector.load %arg4[%33, %c0_12, %c0_13] : memref<2x32x32xbf16, #tpu.memory_space<vmem>>, vector<1x32x32xbf16>
    %35 = vector.shape_cast %34 : vector<1x32x32xbf16> to vector<32x32xbf16>
    %cst_14 = arith.constant dense<0.000000e+00> : vector<32x32xf32>
    %36 = tpu.matmul %35, %32, %cst_14 {dimension_numbers = #tpu.dot_dimension_numbers<[1], [0], [0], [1], [0, 0, 1, 1], [], []>} : vector<32x32xbf16>, vector<32x32xbf16>, vector<32x32xf32> -> vector<32x32xf32>
    %37 = arith.index_cast %c0_i32 : i32 to index
    %c0_15 = arith.constant 0 : index
    %c0_16 = arith.constant 0 : index
    %38 = vector.load %arg5[%37, %c0_15, %c0_16] : memref<2x32x1xf32, #tpu.memory_space<vmem>>, vector<1x32x1xf32>
    %39 = vector.shape_cast %38 : vector<1x32x1xf32> to vector<32x1xf32>
    %40 = vector.broadcast %39 : vector<32x1xf32> to vector<32x32xf32>
    %41 = arith.addf %36, %40 : vector<32x32xf32>
    %42 = arith.addf %3, %41 : vector<32x32xf32>
    %c1_i32 = arith.constant 1 : i32
    %cst_17 = arith.constant 0.000000e+00 : f32
    %43 = vector.broadcast %cst_17 : f32 to vector<32x32xf32>
    %44 = arith.maximumf %42, %43 : vector<32x32xf32>
    %45 = arith.truncf %44 : vector<32x32xf32> to vector<32x32xbf16>
    %46 = arith.index_cast %c1_i32 : i32 to index
    %c0_18 = arith.constant 0 : index
    %c0_19 = arith.constant 0 : index
    %c0_20 = arith.constant 0 : index
    %47 = vector.load %arg2[%46, %c0_18, %c0_19, %c0_20] : memref<2x3x32x32xbf16, #tpu.memory_space<vmem>>, vector<1x3x32x32xbf16>
    %48 = vector.shape_cast %47 : vector<1x3x32x32xbf16> to vector<3x32x32xbf16>
    %49 = vector.extract_strided_slice %48 {offsets = [0, 0, 0], sizes = [1, 32, 32], strides = [1, 1, 1]} : vector<3x32x32xbf16> to vector<1x32x32xbf16>
    %50 = vector.shape_cast %49 : vector<1x32x32xbf16> to vector<32x32xbf16>
    %cst_21 = arith.constant dense<0.000000e+00> : vector<32x32xf32>
    %51 = tpu.matmul %50, %45, %cst_21 {dimension_numbers = #tpu.dot_dimension_numbers<[1], [0], [0], [1], [0, 0, 1, 1], [], []>} : vector<32x32xbf16>, vector<32x32xbf16>, vector<32x32xf32> -> vector<32x32xf32>
    %52 = vector.extract_strided_slice %48 {offsets = [1, 0, 0], sizes = [1, 32, 32], strides = [1, 1, 1]} : vector<3x32x32xbf16> to vector<1x32x32xbf16>
    %53 = vector.shape_cast %52 : vector<1x32x32xbf16> to vector<32x32xbf16>
    %cst_22 = arith.constant dense<0.000000e+00> : vector<32x32xf32>
    %54 = tpu.matmul %53, %45, %cst_22 {dimension_numbers = #tpu.dot_dimension_numbers<[1], [0], [0], [1], [0, 0, 1, 1], [], []>} : vector<32x32xbf16>, vector<32x32xbf16>, vector<32x32xf32> -> vector<32x32xf32>
    %55 = vector.extract_strided_slice %48 {offsets = [2, 0, 0], sizes = [1, 32, 32], strides = [1, 1, 1]} : vector<3x32x32xbf16> to vector<1x32x32xbf16>
    %56 = vector.shape_cast %55 : vector<1x32x32xbf16> to vector<32x32xbf16>
    %cst_23 = arith.constant dense<0.000000e+00> : vector<32x32xf32>
    %57 = tpu.matmul %56, %45, %cst_23 {dimension_numbers = #tpu.dot_dimension_numbers<[1], [0], [0], [1], [0, 0, 1, 1], [], []>} : vector<32x32xbf16>, vector<32x32xbf16>, vector<32x32xf32> -> vector<32x32xf32>
    %58 = arith.index_cast %c1_i32 : i32 to index
    %c0_24 = arith.constant 0 : index
    %c0_25 = arith.constant 0 : index
    %59 = vector.load %arg3[%58, %c0_24, %c0_25] : memref<2x32x1xf32, #tpu.memory_space<vmem>>, vector<1x32x1xf32>
    %60 = vector.shape_cast %59 : vector<1x32x1xf32> to vector<32x1xf32>
    %61 = vector.broadcast %60 : vector<32x1xf32> to vector<32x32xf32>
    %62 = arith.addf %54, %61 : vector<32x32xf32>
    %63 = vector.extract_strided_slice %51 {offsets = [0, 0], sizes = [32, 31], strides = [1, 1]} : vector<32x32xf32> to vector<32x31xf32>
    %64 = tpu.concatenate %0, %63 in 1 : vector<32x1xf32>, vector<32x31xf32> -> vector<32x32xf32>
    %65 = arith.addf %62, %64 : vector<32x32xf32>
    %66 = vector.extract_strided_slice %57 {offsets = [0, 1], sizes = [32, 31], strides = [1, 1]} : vector<32x32xf32> to vector<32x31xf32>
    %67 = tpu.concatenate %66, %0 in 1 : vector<32x31xf32>, vector<32x1xf32> -> vector<32x32xf32>
    %68 = arith.addf %65, %67 : vector<32x32xf32>
    %cst_26 = arith.constant 0.000000e+00 : f32
    %69 = vector.broadcast %cst_26 : f32 to vector<32x32xf32>
    %70 = arith.maximumf %68, %69 : vector<32x32xf32>
    %71 = arith.truncf %70 : vector<32x32xf32> to vector<32x32xbf16>
    %72 = arith.index_cast %c1_i32 : i32 to index
    %c0_27 = arith.constant 0 : index
    %c0_28 = arith.constant 0 : index
    %73 = vector.load %arg4[%72, %c0_27, %c0_28] : memref<2x32x32xbf16, #tpu.memory_space<vmem>>, vector<1x32x32xbf16>
    %74 = vector.shape_cast %73 : vector<1x32x32xbf16> to vector<32x32xbf16>
    %cst_29 = arith.constant dense<0.000000e+00> : vector<32x32xf32>
    %75 = tpu.matmul %74, %71, %cst_29 {dimension_numbers = #tpu.dot_dimension_numbers<[1], [0], [0], [1], [0, 0, 1, 1], [], []>} : vector<32x32xbf16>, vector<32x32xbf16>, vector<32x32xf32> -> vector<32x32xf32>
    %76 = arith.index_cast %c1_i32 : i32 to index
    %c0_30 = arith.constant 0 : index
    %c0_31 = arith.constant 0 : index
    %77 = vector.load %arg5[%76, %c0_30, %c0_31] : memref<2x32x1xf32, #tpu.memory_space<vmem>>, vector<1x32x1xf32>
    %78 = vector.shape_cast %77 : vector<1x32x1xf32> to vector<32x1xf32>
    %79 = vector.broadcast %78 : vector<32x1xf32> to vector<32x32xf32>
    %80 = arith.addf %75, %79 : vector<32x32xf32>
    %81 = arith.addf %42, %80 : vector<32x32xf32>
    %c2_i32 = arith.constant 2 : i32
    %82 = arith.truncf %81 : vector<32x32xf32> to vector<32x32xbf16>
    %c0_32 = arith.constant 0 : index
    %c0_33 = arith.constant 0 : index
    %c0_34 = arith.constant 0 : index
    %83 = vector.load %arg6[%c0_32, %c0_33, %c0_34] : memref<1x32x32xbf16, #tpu.memory_space<vmem>>, vector<1x32x32xbf16>
    %84 = vector.shape_cast %83 : vector<1x32x32xbf16> to vector<32x32xbf16>
    %85 = vector.shape_cast %82 : vector<32x32xbf16> to vector<1x32x32xbf16>
    tpu.vector_store %arg6[%c0_32, %c0_33, %c0_34], %85 {strides = array<i32>} : memref<1x32x32xbf16, #tpu.memory_space<vmem>>, vector<1x32x32xbf16>,
    return
  }
  func.func @transform_0(%arg0: i32) -> (i32, i32, i32) {
    %c0_i32 = arith.constant 0 : i32
    %c0_i32_0 = arith.constant 0 : i32
    %c0_i32_1 = arith.constant 0 : i32
    return %arg0, %c0_i32, %c0_i32_0 : i32, i32, i32
  }
  func.func @transform_1(%arg0: i32) -> (i32, i32, i32, i32) {
    %c0_i32 = arith.constant 0 : i32
    %c0_i32_0 = arith.constant 0 : i32
    %c0_i32_1 = arith.constant 0 : i32
    %c0_i32_2 = arith.constant 0 : i32
    %c0_i32_3 = arith.constant 0 : i32
    return %c0_i32, %c0_i32_0, %c0_i32_1, %c0_i32_2 : i32, i32, i32, i32
  }
  func.func @transform_2(%arg0: i32) -> (i32, i32, i32) {
    %c0_i32 = arith.constant 0 : i32
    %c0_i32_0 = arith.constant 0 : i32
    %c0_i32_1 = arith.constant 0 : i32
    %c0_i32_2 = arith.constant 0 : i32
    return %c0_i32, %c0_i32_0, %c0_i32_1 : i32, i32, i32
  }
  func.func @transform_3(%arg0: i32) -> (i32, i32, i32) {
    %c0_i32 = arith.constant 0 : i32
    %c0_i32_0 = arith.constant 0 : i32
    %c0_i32_1 = arith.constant 0 : i32
    %c0_i32_2 = arith.constant 0 : i32
    return %c0_i32, %c0_i32_0, %c0_i32_1 : i32, i32, i32
  }
  func.func @transform_4(%arg0: i32) -> (i32, i32, i32) {
    %c0_i32 = arith.constant 0 : i32
    %c0_i32_0 = arith.constant 0 : i32
    %c0_i32_1 = arith.constant 0 : i32
    %c0_i32_2 = arith.constant 0 : i32
    return %c0_i32, %c0_i32_0, %c0_i32_1 : i32, i32, i32
  }
  func.func @transform_5(%arg0: i32) -> (i32, i32, i32) {
    %c0_i32 = arith.constant 0 : i32
    %c0_i32_0 = arith.constant 0 : i32
    %c0_i32_1 = arith.constant 0 : i32
    return %arg0, %c0_i32, %c0_i32_0 : i32, i32, i32
  }
}

</mosaic_0001>

<bundles_post_ra>
// kernel: tile.15
= control target key start
LH: loop header
LB: loop body
LE: loop exit
PB: predicated region body
PF: predicated region fallthrough
CT: control target
= control target key end

     0   :  { %s22_s0 = inlined_call_operand.vmem [shape: f32[32], index: 0, kind: input, shape index: {}]   ;;  %s23_s1 = inlined_call_operand.vmem [shape: f32[2,32], index: 1, kind: output, shape index: {}]  }
   0x1   :  { %v4_v0 = vld [vmem:[%s22_s0] ss:$0 sm:$0xff] }
   0x2   :  { %5 = vst [vmem:[%s23_s1] sm:$0x3] %v4_v0 }

// kernel: tile.0
= control target key start
LH: loop header
LB: loop body
LE: loop exit
PB: predicated region body
PF: predicated region fallthrough
CT: control target
= control target key end

     0   :  { %s355_s8 = smov 125   ;;  %s356_s9 = smov 126   ;;  %vm8_vm0 = vcmask 7168   ;;  %s654_s0 = inlined_call_operand.vmem [shape: f32[2,32], index: 0, kind: input, shape index: {}]   ;;  %s655_s1 = inlined_call_operand.vmem [shape: f32[64,1], index: 1, kind: output, shape index: {}]  }
   0x1   :  { %v5_v0 = vld [vmem:[%s654_s0] sm:$0x3]  ;;  %s354_s0 = smov 127   ;;  %s357_s10 = smov 124  }
   0x2   :  { %6 = vst [vmem:[#allocation0] sm:$0x3] %v5_v0  ;;  %s358_s11 = smov 123   ;;  %s359_s12 = smov 122  }
   0x3   :  { %s360_s13 = smov 121   ;;  %s361_s14 = smov 120  }
   0x4   :  { %s362_s15 = smov 119   ;;  %s363_s16 = smov 118  }
   0x5   :  { %s364_s17 = smov 117   ;;  %s365_s18 = smov 116  }
   0x6   :  { %s366_s19 = smov 115   ;;  %s367_s20 = smov 114  }
   0x7   :  { %s368_s21 = smov 113   ;;  %s369_s22 = smov 112  }
   0x8   :  { %s370_s23 = smov 111   ;;  %s371_s24 = smov 110  }
   0x9   :  { %v12_v1 = vld [vmem:[#allocation0] sm:$0x3]   ;;  %s372_s25 = smov 109   ;;  %s373_s26 = smov 108  }
   0xa   :  { %v28_v2 = vld [vmem:[#allocation0] sm:$0x3]   ;;  %13 = vrot.lane.b32.xlu0 %v12_v1, %s354_s0  ;;  %s374_s27 = smov 107   ;;  %s375_s28 = smov 106  }
   0xb   :  { %29 = vrot.lane.b32.xlu1 %v28_v2, %s355_s8  ;;  %v20_v3 = vld [vmem:[#allocation0] sm:$0x3]   ;;  %s376_s29 = smov 105   ;;  %s377_s30 = smov 104  }
   0xc   :  { %v36_v4 = vld [vmem:[#allocation0] sm:$0x3]   ;;  %s378_s6 = smov 103   ;;  %s379_s7 = smov 102  }
   0xd   :  { %v44_v5 = vld [vmem:[#allocation0] sm:$0x3]   ;;  %s380_s0 = smov 101   ;;  %s381_s8 = smov 100  }
   0xe   :  { %21 = vrot.lane.b32.xlu0 %v20_v3, %s356_s9  ;;  %v52_v6 = vld [vmem:[#allocation0] sm:$0x3]   ;;  %s382_s9 = smov 99  }
   0xf   :  { %37 = vrot.lane.b32.xlu1 %v36_v4, %s357_s10  ;;  %v60_v7 = vld [vmem:[#allocation0] sm:$0x3]   ;;  %s383_s10 = smov 98  }
  0x10   :  { %v68_v8 = vld [vmem:[#allocation0] sm:$0x3]  }
  0x11   :  { %v76_v9 = vld [vmem:[#allocation0] sm:$0x3]  }
  0x12   :  { %45 = vrot.lane.b32.xlu0 %v44_v5, %s358_s11  ;;  %v84_v10 = vld [vmem:[#allocation0] sm:$0x3]   ;;  %s384_s11 = smov 97  }
  0x13   :  { %53 = vrot.lane.b32.xlu1 %v52_v6, %s359_s12  ;;  %v92_v11 = vld [vmem:[#allocation0] sm:$0x3]  }
  0x14   :  { %v100_v12 = vld [vmem:[#allocation0] sm:$0x3]  }
  0x15   :  { %v108_v13 = vld [vmem:[#allocation0] sm:$0x3]  }
  0x16   :  { %61 = vrot.lane.b32.xlu0 %v60_v7, %s360_s13  ;;  %v116_v14 = vld [vmem:[#allocation0] sm:$0x3]  }
  0x17   :  { %69 = vrot.lane.b32.xlu1 %v68_v8, %s361_s14  ;;  %v124_v15 = vld [vmem:[#allocation0] sm:$0x3]  }
  0x18   :  { %v132_v16 = vld [vmem:[#allocation0] sm:$0x3]  }
  0x19   :  { %v140_v17 = vld [vmem:[#allocation0] sm:$0x3]  }
  0x1a   :  { %77 = vrot.lane.b32.xlu0 %v76_v9, %s362_s15  ;;  %v148_v18 = vld [vmem:[#allocation0] sm:$0x3]  }
  0x1b   :  { %85 = vrot.lane.b32.xlu1 %v84_v10, %s363_s16  ;;  %v156_v19 = vld [vmem:[#allocation0] sm:$0x3]  }
  0x1c   :  { %v164_v20 = vld [vmem:[#allocation0] sm:$0x3]  }
  0x1d   :  { %v172_v21 = vld [vmem:[#allocation0] sm:$0x3]  }
  0x1e   :  { %93 = vrot.lane.b32.xlu0 %v92_v11, %s364_s17  ;;  %v180_v22 = vld [vmem:[#allocation0] sm:$0x3]  }
  0x1f   :  { %101 = vrot.lane.b32.xlu1 %v100_v12, %s365_s18  ;;  %v188_v23 = vld [vmem:[#allocation0] sm:$0x3]  }
  0x20   :  { %v196_v24 = vld [vmem:[#allocation0] sm:$0x3]  }
  0x21   :  { %v204_v25 = vld [vmem:[#allocation0] sm:$0x3]  }
  0x22   :  { %109 = vrot.lane.b32.xlu0 %v108_v13, %s366_s19  ;;  %v212_v26 = vld [vmem:[#allocation0] sm:$0x3]  }
  0x23   :  { %117 = vrot.lane.b32.xlu1 %v116_v14, %s367_s20  ;;  %v7_v27 = vld [vmem:[#allocation0] sm:$0x3]  }
  0x24   :  { %9 = vst.msk [vmem:[%s655_s1] sm:$0x1] %vm8_vm0, %v7_v27   ;;  %260 = vst.msk [vmem:[%s655_s1 + $0x1f] sm:$0x2] %vm8_vm0, %v7_v27   ;;  %v220_v28 = vld [vmem:[#allocation0] sm:$0x3]  }
  0x25   :  { %v228_v29 = vld [vmem:[#allocation0] sm:$0x3]  }
  0x26   :  { %125 = vrot.lane.b32.xlu0 %v124_v15, %s368_s21  ;;  %v236_v30 = vld [vmem:[#allocation0] sm:$0x3]  }
  0x27   :  { %133 = vrot.lane.b32.xlu1 %v132_v16, %s369_s22  ;;  %v244_v31 = vld [vmem:[#allocation0] sm:$0x3]  }
  0x28   :  { %v252_v32 = vld [vmem:[#allocation0] sm:$0x3]  }
  0x2a   :  { %141 = vrot.lane.b32.xlu0 %v140_v17, %s370_s23 }
  0x2b   :  { %149 = vrot.lane.b32.xlu1 %v148_v18, %s371_s24 }
  0x2e   :  { %157 = vrot.lane.b32.xlu0 %v156_v19, %s372_s25 }
  0x2f   :  { %165 = vrot.lane.b32.xlu1 %v164_v20, %s373_s26 }
  0x32   :  { %173 = vrot.lane.b32.xlu0 %v172_v21, %s374_s27 }
  0x33   :  { %181 = vrot.lane.b32.xlu1 %v180_v22, %s375_s28 }
  0x36   :  { %189 = vrot.lane.b32.xlu0 %v188_v23, %s376_s29 }
  0x37   :  { %197 = vrot.lane.b32.xlu1 %v196_v24, %s377_s30 }
  0x3a   :  { %205 = vrot.lane.b32.xlu0 %v204_v25, %s378_s6 }
  0x3b   :  { %213 = vrot.lane.b32.xlu1 %v212_v26, %s379_s7 }
  0x3e   :  { %221 = vrot.lane.b32.xlu0 %v220_v28, %s380_s0 }
  0x3f   :  { %229 = vrot.lane.b32.xlu1 %v228_v29, %s381_s8 }
  0x42   :  { %237 = vrot.lane.b32.xlu0 %v236_v30, %s382_s9 }
  0x43   :  { %245 = vrot.lane.b32.xlu1 %v244_v31, %s383_s10 }
  0x46   :  { %253 = vrot.lane.b32.xlu0 %v252_v32, %s384_s11 }
  0x7c   :  { %v14_v33 = vpop.permute.xlu0 %13  }
  0x7d   :  { %v30_v34 = vpop.permute.xlu1 %29   ;;  %261 = vst.msk [vmem:[%s655_s1 + $0x1] sm:$0x1] %vm8_vm0, %v14_v33   ;;  %262 = vst.msk [vmem:[%s655_s1 + $0x20] sm:$0x2] %vm8_vm0, %v14_v33  }
  0x7e   :  { %265 = vst.msk [vmem:[%s655_s1 + $0x3] sm:$0x1] %vm8_vm0, %v30_v34   ;;  %266 = vst.msk [vmem:[%s655_s1 + $0x22] sm:$0x2] %vm8_vm0, %v30_v34  }
  0x80   :  { %v22_v35 = vpop.permute.xlu0 %21  }
  0x81   :  { %v38_v36 = vpop.permute.xlu1 %37   ;;  %263 = vst.msk [vmem:[%s655_s1 + $0x2] sm:$0x1] %vm8_vm0, %v22_v35   ;;  %264 = vst.msk [vmem:[%s655_s1 + $0x21] sm:$0x2] %vm8_vm0, %v22_v35  }
  0x82   :  { %267 = vst.msk [vmem:[%s655_s1 + $0x4] sm:$0x1] %vm8_vm0, %v38_v36   ;;  %268 = vst.msk [vmem:[%s655_s1 + $0x23] sm:$0x2] %vm8_vm0, %v38_v36  }
  0x84   :  { %v46_v37 = vpop.permute.xlu0 %45  }
  0x85   :  { %v54_v38 = vpop.permute.xlu1 %53   ;;  %269 = vst.msk [vmem:[%s655_s1 + $0x5] sm:$0x1] %vm8_vm0, %v46_v37   ;;  %270 = vst.msk [vmem:[%s655_s1 + $0x24] sm:$0x2] %vm8_vm0, %v46_v37  }
  0x86   :  { %271 = vst.msk [vmem:[%s655_s1 + $0x6] sm:$0x1] %vm8_vm0, %v54_v38   ;;  %272 = vst.msk [vmem:[%s655_s1 + $0x25] sm:$0x2] %vm8_vm0, %v54_v38  }
  0x88   :  { %v62_v39 = vpop.permute.xlu0 %61  }
  0x89   :  { %v70_v40 = vpop.permute.xlu1 %69   ;;  %273 = vst.msk [vmem:[%s655_s1 + $0x7] sm:$0x1] %vm8_vm0, %v62_v39   ;;  %274 = vst.msk [vmem:[%s655_s1 + $0x26] sm:$0x2] %vm8_vm0, %v62_v39  }
  0x8a   :  { %275 = vst.msk [vmem:[%s655_s1 + $0x8] sm:$0x1] %vm8_vm0, %v70_v40   ;;  %276 = vst.msk [vmem:[%s655_s1 + $0x27] sm:$0x2] %vm8_vm0, %v70_v40  }
  0x8c   :  { %v78_v41 = vpop.permute.xlu0 %77  }
  0x8d   :  { %v86_v42 = vpop.permute.xlu1 %85   ;;  %277 = vst.msk [vmem:[%s655_s1 + $0x9] sm:$0x1] %vm8_vm0, %v78_v41   ;;  %278 = vst.msk [vmem:[%s655_s1 + $0x28] sm:$0x2] %vm8_vm0, %v78_v41  }
  0x8e   :  { %279 = vst.msk [vmem:[%s655_s1 + $0xa] sm:$0x1] %vm8_vm0, %v86_v42   ;;  %280 = vst.msk [vmem:[%s655_s1 + $0x29] sm:$0x2] %vm8_vm0, %v86_v42  }
  0x90   :  { %v94_v43 = vpop.permute.xlu0 %93  }
  0x91   :  { %v102_v44 = vpop.permute.xlu1 %101   ;;  %281 = vst.msk [vmem:[%s655_s1 + $0xb] sm:$0x1] %vm8_vm0, %v94_v43   ;;  %282 = vst.msk [vmem:[%s655_s1 + $0x2a] sm:$0x2] %vm8_vm0, %v94_v43  }
  0x92   :  { %283 = vst.msk [vmem:[%s655_s1 + $0xc] sm:$0x1] %vm8_vm0, %v102_v44   ;;  %284 = vst.msk [vmem:[%s655_s1 + $0x2b] sm:$0x2] %vm8_vm0, %v102_v44  }
  0x94   :  { %v110_v45 = vpop.permute.xlu0 %109  }
  0x95   :  { %v118_v46 = vpop.permute.xlu1 %117   ;;  %285 = vst.msk [vmem:[%s655_s1 + $0xd] sm:$0x1] %vm8_vm0, %v110_v45   ;;  %286 = vst.msk [vmem:[%s655_s1 + $0x2c] sm:$0x2] %vm8_vm0, %v110_v45  }
  0x96   :  { %287 = vst.msk [vmem:[%s655_s1 + $0xe] sm:$0x1] %vm8_vm0, %v118_v46   ;;  %288 = vst.msk [vmem:[%s655_s1 + $0x2d] sm:$0x2] %vm8_vm0, %v118_v46  }
  0x98   :  { %v126_v47 = vpop.permute.xlu0 %125  }
  0x99   :  { %v134_v48 = vpop.permute.xlu1 %133   ;;  %289 = vst.msk [vmem:[%s655_s1 + $0xf] sm:$0x1] %vm8_vm0, %v126_v47   ;;  %290 = vst.msk [vmem:[%s655_s1 + $0x2e] sm:$0x2] %vm8_vm0, %v126_v47  }
  0x9a   :  { %291 = vst.msk [vmem:[%s655_s1 + $0x10] sm:$0x1] %vm8_vm0, %v134_v48   ;;  %292 = vst.msk [vmem:[%s655_s1 + $0x2f] sm:$0x2] %vm8_vm0, %v134_v48  }
  0x9c   :  { %v142_v49 = vpop.permute.xlu0 %141  }
  0x9d   :  { %v150_v50 = vpop.permute.xlu1 %149   ;;  %293 = vst.msk [vmem:[%s655_s1 + $0x11] sm:$0x1] %vm8_vm0, %v142_v49   ;;  %294 = vst.msk [vmem:[%s655_s1 + $0x30] sm:$0x2] %vm8_vm0, %v142_v49  }
  0x9e   :  { %295 = vst.msk [vmem:[%s655_s1 + $0x12] sm:$0x1] %vm8_vm0, %v150_v50   ;;  %296 = vst.msk [vmem:[%s655_s1 + $0x31] sm:$0x2] %vm8_vm0, %v150_v50  }
  0xa0   :  { %v158_v51 = vpop.permute.xlu0 %157  }
  0xa1   :  { %v166_v52 = vpop.permute.xlu1 %165   ;;  %297 = vst.msk [vmem:[%s655_s1 + $0x13] sm:$0x1] %vm8_vm0, %v158_v51   ;;  %298 = vst.msk [vmem:[%s655_s1 + $0x32] sm:$0x2] %vm8_vm0, %v158_v51  }
  0xa2   :  { %299 = vst.msk [vmem:[%s655_s1 + $0x14] sm:$0x1] %vm8_vm0, %v166_v52   ;;  %300 = vst.msk [vmem:[%s655_s1 + $0x33] sm:$0x2] %vm8_vm0, %v166_v52  }
  0xa4   :  { %v174_v53 = vpop.permute.xlu0 %173  }
  0xa5   :  { %v182_v54 = vpop.permute.xlu1 %181   ;;  %301 = vst.msk [vmem:[%s655_s1 + $0x15] sm:$0x1] %vm8_vm0, %v174_v53   ;;  %302 = vst.msk [vmem:[%s655_s1 + $0x34] sm:$0x2] %vm8_vm0, %v174_v53  }
  0xa6   :  { %303 = vst.msk [vmem:[%s655_s1 + $0x16] sm:$0x1] %vm8_vm0, %v182_v54   ;;  %304 = vst.msk [vmem:[%s655_s1 + $0x35] sm:$0x2] %vm8_vm0, %v182_v54  }
  0xa8   :  { %v190_v55 = vpop.permute.xlu0 %189  }
  0xa9   :  { %v198_v56 = vpop.permute.xlu1 %197   ;;  %305 = vst.msk [vmem:[%s655_s1 + $0x17] sm:$0x1] %vm8_vm0, %v190_v55   ;;  %306 = vst.msk [vmem:[%s655_s1 + $0x36] sm:$0x2] %vm8_vm0, %v190_v55  }
  0xaa   :  { %307 = vst.msk [vmem:[%s655_s1 + $0x18] sm:$0x1] %vm8_vm0, %v198_v56   ;;  %308 = vst.msk [vmem:[%s655_s1 + $0x37] sm:$0x2] %vm8_vm0, %v198_v56  }
  0xac   :  { %v206_v57 = vpop.permute.xlu0 %205  }
  0xad   :  { %v214_v58 = vpop.permute.xlu1 %213   ;;  %309 = vst.msk [vmem:[%s655_s1 + $0x19] sm:$0x1] %vm8_vm0, %v206_v57   ;;  %310 = vst.msk [vmem:[%s655_s1 + $0x38] sm:$0x2] %vm8_vm0, %v206_v57  }
  0xae   :  { %311 = vst.msk [vmem:[%s655_s1 + $0x1a] sm:$0x1] %vm8_vm0, %v214_v58   ;;  %312 = vst.msk [vmem:[%s655_s1 + $0x39] sm:$0x2] %vm8_vm0, %v214_v58  }
  0xb0   :  { %v222_v59 = vpop.permute.xlu0 %221  }
  0xb1   :  { %v230_v60 = vpop.permute.xlu1 %229   ;;  %313 = vst.msk [vmem:[%s655_s1 + $0x1b] sm:$0x1] %vm8_vm0, %v222_v59   ;;  %314 = vst.msk [vmem:[%s655_s1 + $0x3a] sm:$0x2] %vm8_vm0, %v222_v59  }
  0xb2   :  { %315 = vst.msk [vmem:[%s655_s1 + $0x1c] sm:$0x1] %vm8_vm0, %v230_v60   ;;  %316 = vst.msk [vmem:[%s655_s1 + $0x3b] sm:$0x2] %vm8_vm0, %v230_v60  }
  0xb4   :  { %v238_v61 = vpop.permute.xlu0 %237  }
  0xb5   :  { %v246_v62 = vpop.permute.xlu1 %245   ;;  %317 = vst.msk [vmem:[%s655_s1 + $0x1d] sm:$0x1] %vm8_vm0, %v238_v61   ;;  %318 = vst.msk [vmem:[%s655_s1 + $0x3c] sm:$0x2] %vm8_vm0, %v238_v61  }
  0xb6   :  { %319 = vst.msk [vmem:[%s655_s1 + $0x1e] sm:$0x1] %vm8_vm0, %v246_v62   ;;  %320 = vst.msk [vmem:[%s655_s1 + $0x3d] sm:$0x2] %vm8_vm0, %v246_v62  }
  0xb8   :  { %v254_v63 = vpop.permute.xlu0 %253  }
  0xb9   :  { %321 = vst.msk [vmem:[%s655_s1 + $0x1f] sm:$0x1] %vm8_vm0, %v254_v63   ;;  %322 = vst.msk [vmem:[%s655_s1 + $0x3e] sm:$0x2] %vm8_vm0, %v254_v63  }

// kernel: _lambda_.5
= control target key start
LH: loop header
LB: loop body
LE: loop exit
PB: predicated region body
PF: predicated region fallthrough
CT: control target
= control target key end

     0   :  { %s655_s12 = smov 0   ;;  %s724_s0 = inlined_call_operand.vmem [shape: bf16[2,8,20], index: 0, kind: input, shape index: {}]   ;;  %s725_s1 = inlined_call_operand.vmem [shape: bf16[3,32,8], index: 1, kind: input, shape index: {}]   ;;  %s726_s2 = inlined_call_operand.vmem [shape: f32[32,1], index: 2, kind: input, shape index: {}]   ;;  %s727_s3 = inlined_call_operand.vmem [shape: bf16[2,32,16], index: 3, kind: output, shape index: {}]  }
   0x1 LB: > { %s536_s13 = sadd.s32 4294967295, %s630_s12   ;;  %p540_p0 = scmp.ge.s32.totalorder %s630_s12, 1  ;;  %s630_s12 = sphi %s655_s12, %s13_s12  }
   0x2   : > { %p136_p1 = scmp.lt.s32.totalorder %s630_s12, 3 }
   0x4   : > { %p137_p2 = pnand %p540_p0, %p136_p1 }
   0x5   : > { %p159_p3 = scmp.lt.s32.totalorder (!%p137_p2), %s536_s13, 1  ;;  %s633_s11 = smov (!%p137_p2), 127  }
   0x6   : > { %140 = sbr.rel (%p137_p2) target bundleno = 467 (0x1d3), region = 32  ;;  %s634_s14 = smov (!%p137_p2), 126  }
   0xb   : > { %v618_v0 = vld [vmem:[%s725_s1] sm:$0xff]   ;;  %vm184_vm0 = vcmask 64512   ;;  %s729_s13 = smov (!%p159_p3, %s536_s13), 1  ;;  %v619_v1 = vld [vmem:[%s725_s1 + $0x10] sm:$0xff]   ;;  %vm191_vm1 = vcmask 1043456   ;;  %v632_v2 = vmov 0  }
   0xc   : > { %586 = vmatprep.mubr.msk.bf16.mxu0 %vm184_vm0, %v618_v0  ;;  %s541_s18 = sshll.u32 %s729_s13, 2  ;;  %592 = vmatprep.mubr.msk.bf16.mxu1 %vm184_vm0, %v619_v1  ;;  %v424_v4 = vld [vmem:[%s726_s2] sm:$0xff]  ;;  %v620_v6 = vld [vmem:[%s725_s1 + $0x8] sm:$0xff]   ;;  %v621_v7 = vld [vmem:[%s725_s1 + $0x18] sm:$0xff]   ;;  %s570_s15 = sshll.u32 %s729_s13, 4  ;;  %vm476_vm2 = vcmask 125952  }
   0xd   : > { %616 = vset.pattern.permute.xlu0 %v632_v2  ;;  %s162_s21 = scalar_lea.vmem %s724_s0, %s541_s18  ;;  %617 = vset.pattern.permute.xlu1 %v632_v2  ;;  %v426_v8 = vld [vmem:[%s726_s2 + $0x10] sm:$0xff]  ;;  %v622_v9 = vld [vmem:[%s725_s1 + $0x20] sm:$0xff]   ;;  %v425_v10 = vld [vmem:[%s726_s2 + $0x8] sm:$0xff]  ;;  %s167_s18 = scalar_lea.vmem %s727_s3, %s570_s15 }
   0xe   : > { %v169_v3 = vld [vmem:[%s162_s21] sm:$0xf]  ;;  %430 = vperm.xlu0 %616, %v424_v4   ;;  %440 = vperm.xlu1 %617, %v426_v8   ;;  %v427_v11 = vld [vmem:[%s726_s2 + $0x18] sm:$0xff]  ;;  %v623_v12 = vld [vmem:[%s725_s1 + $0x28] sm:$0xff]  }
   0xf   : > { %602 = vmatprep.subr.msk.bf16.mxu0 %vm191_vm1, %v169_v3  ;;  %603 = vmatprep.subr.msk.bf16.mxu1 %vm191_vm1, %v169_v3  ;;  %v193_v5 = vsel %vm191_vm1, %v169_v3, 0 }
  0x10   : > { %585 = vmatpush3.bf16.msra.mxu0 %v193_v5  ;;  %591 = vmatpush3.bf16.msra.mxu1 %v193_v5 }
  0x11   : > { %604 = vmatprep.subr.msk.bf16.mxu0 %vm191_vm1, %v169_v3 }
  0x12   : > { %435 = vperm.xlu0 %616, %v425_v10   ;;  %445 = vperm.xlu1 %617, %v427_v11  }
  0x13   : > { %587 = vmatmul.mubr.msk.bf16.vlgmr.msra.gmra.mxu0 %vm184_vm0, %v620_v6  ;;  %593 = vmatmul.mubr.msk.bf16.vlgmr.msra.gmra.mxu1 %vm184_vm0, %v621_v7 }
  0x14   : > { %597 = vmatpush3.bf16.msra.mxu0 %v193_v5  ;;  %598 = vmatprep.mubr.msk.bf16.mxu0 %vm184_vm0, %v622_v9 }
  0x1b   : > { %599 = vmatmul.mubr.msk.bf16.vlgmr.msra.gmra.mxu0 %vm184_vm0, %v623_v12 }
  0x89   : > { %v431_v25 = vpop.permute.xlu0 %430  ;;  %v441_v26 = vpop.permute.xlu1 %440 }
  0x8d   : > { %v436_v27 = vpop.permute.xlu0 %435  ;;  %v446_v28 = vpop.permute.xlu1 %445 }
  0xd3   : > { %v588_v13 = vpop.f32.mrf.mxu0  ;;  %v594_v14 = vpop.f32.mrf.mxu1 }
  0xd4   : > { %322 = vrot.lane.b32.xlu0 %v594_v14, %s633_s11 }
  0xd5   : > { %v229_v15 = vpop.f32.mrf.mxu0  ;;  %v299_v16 = vpop.f32.mrf.mxu1 }
  0xd7   : > { %v589_v17 = vpop.f32.mrf.mxu0  ;;  %v595_v18 = vpop.f32.mrf.mxu1 }
  0xd8   : > { %318 = vrot.lane.b32.xlu0 %v299_v16, %s633_s11  ;;  %324 = vrot.lane.b32.xlu1 %v595_v18, %s633_s11 }
  0xd9   : > { %v232_v19 = vpop.f32.mrf.mxu0  ;;  %v302_v20 = vpop.f32.mrf.mxu1 }
  0xdb   : > { %v600_v21 = vpop.f32.mrf.mxu0 }
  0xdc   : > { %320 = vrot.lane.b32.xlu1 %v302_v20, %s633_s11 }
  0xdd   : > { %v389_v22 = vpop.f32.mrf.mxu0 }
  0xde   : > { %408 = vrot.lane.b32.xlu0 %v389_v22, %s634_s14 }
  0xdf   : > { %v601_v23 = vpop.f32.mrf.mxu0 }
  0xe1   : > { %v392_v24 = vpop.f32.mrf.mxu0 }
  0xe2   : > { %412 = vrot.lane.b32.xlu0 %v600_v21, %s634_s14  ;;  %410 = vrot.lane.b32.xlu1 %v392_v24, %s634_s14 }
  0xe6   : > { %414 = vrot.lane.b32.xlu1 %v601_v23, %s634_s14 }
 0x146   : > { %v323_v29 = vpop.permute.xlu0 %322 }
 0x147   : > { %v332_v36 = vadd.f32 %v588_v13, %v323_v29 }
 0x14a   : > { %v325_v30 = vpop.permute.xlu1 %324  ;;  %v319_v31 = vpop.permute.xlu0 %318 }
 0x14b   : > { %v330_v32 = vadd.f32 %v319_v31, %v229_v15  ;;  %v333_v44 = vadd.f32 %v589_v17, %v325_v30 }
 0x14e   : > { %v321_v33 = vpop.permute.xlu1 %320 }
 0x14f   : > { %v331_v37 = vadd.f32 %v321_v33, %v232_v19 }
 0x150   : > { %v409_v34 = vpop.permute.xlu0 %408 }
 0x151   : > { %v420_v35 = vadd.f32 %v409_v34, %v330_v32 }
 0x153   : > { %v448_v38 = vadd.f32 %v431_v25, %v420_v35 }
 0x154   : > { %v413_v39 = vpop.permute.xlu0 %412  ;;  %v411_v40 = vpop.permute.xlu1 %410 }
 0x155   : > { %v571_v41 = vpack.c.bf16 %v448_v38, %v448_v38  ;;  %v422_v42 = vadd.f32 %v413_v39, %v332_v36  ;;  %v421_v43 = vadd.f32 %v411_v40, %v331_v37 }
 0x157   : > { %v450_v45 = vadd.f32 %v441_v26, %v422_v42  ;;  %v449_v46 = vadd.f32 %v436_v27, %v421_v43  ;;  %464 = vrot.lane.b32.xlu0 %v571_v41, %s633_s11 }
 0x158   : > { %v415_v47 = vpop.permute.xlu1 %414 }
 0x159   : > { %v573_v48 = vpack.c.bf16 %v450_v45, %v450_v45  ;;  %v572_v49 = vpack.c.bf16 %v449_v46, %v449_v46  ;;  %v423_v50 = vadd.f32 %v415_v47, %v333_v44 }
 0x15b   : > { %v451_v51 = vadd.f32 %v446_v28, %v423_v50  ;;  %468 = vrot.lane.b32.xlu0 %v573_v48, %s633_s11  ;;  %466 = vrot.lane.b32.xlu1 %v572_v49, %s633_s11 }
 0x15d   : > { %v574_v52 = vpack.c.bf16 %v451_v51, %v451_v51 }
 0x15f   : > { %470 = vrot.lane.b32.xlu1 %v574_v52, %s633_s11 }
 0x1c9   : > { %v465_v53 = vpop.permute.xlu0 %464 }
 0x1ca   : > { %477 = vst.msk [vmem:[%s167_s18] sm:$0xf] %vm476_vm2, %v465_v53 }
 0x1cd   : > { %v469_v54 = vpop.permute.xlu0 %468  ;;  %v467_v55 = vpop.permute.xlu1 %466 }
 0x1ce   : > { %479 = vst.msk [vmem:[%s167_s18 + $0x8] sm:$0xf] %vm476_vm2, %v469_v54  ;;  %478 = vst.msk [vmem:[%s167_s18 + $0x4] sm:$0xf] %vm476_vm2, %v467_v55 }
 0x1d1   : > { %v471_v56 = vpop.permute.xlu1 %470 }
 0x1d2   : > { %480 = vst.msk [vmem:[%s167_s18 + $0xc] sm:$0xf] %vm476_vm2, %v471_v56 }
 0x1d3 PF: > { %s13_s12 = sadd.s32 1, %s630_s12  }
 0x1d4   : > { %p10_p4 = scmp.ge.s32.totalorder %s13_s12, 4  }
 0x1d6   :  { %12 = sbr.rel (!%p10_p4) target bundleno = 1 (0x1), region = 64 }

// kernel: _lambda_.7
= control target key start
LH: loop header
LB: loop body
LE: loop exit
PB: predicated region body
PF: predicated region fallthrough
CT: control target
= control target key end

     0   :  { %s735_s12 = smov 0   ;;  %s830_s0 = inlined_call_operand.vmem [shape: bf16[2,32,18], index: 0, kind: input, shape index: {}]   ;;  %s831_s1 = inlined_call_operand.vmem [shape: bf16[2,64,32], index: 1, kind: input, shape index: {}]   ;;  %s832_s2 = inlined_call_operand.vmem [shape: f32[64,1], index: 2, kind: input, shape index: {}]   ;;  %s833_s3 = inlined_call_operand.vmem [shape: bf16[2,64,17], index: 3, kind: output, shape index: {}]  }
   0x1 LB: > { %s592_s13 = sadd.s32 4294967295, %s711_s12   ;;  %p596_p0 = scmp.ge.s32.totalorder %s711_s12, 1  ;;  %s711_s12 = sphi %s735_s12, %s13_s12  }
   0x2   : > { %p137_p1 = scmp.lt.s32.totalorder %s711_s12, 3 }
   0x4   : > { %p138_p2 = pnand %p596_p0, %p137_p1 }
   0x5   : > { %p161_p3 = scmp.lt.s32.totalorder (!%p138_p2), %s592_s13, 1  ;;  %s714_s25 = smov (!%p138_p2), 127  }
   0x6   : > { %141 = sbr.rel (%p138_p2) target bundleno = 356 (0x164), region = 32 }
   0xb   : > { %vm216_vm0 = vcmask 261120   ;;  %v697_v0 = vld [vmem:[%s831_s1 + $0x20] sm:$0xff]   ;;  %s835_s13 = smov (!%p161_p3, %s592_s13), 1  ;;  %v713_v1 = vmov 0   ;;  %v442_v5 = vld [vmem:[%s832_s2 + $0x10] sm:$0xff]  ;;  %v698_v7 = vld [vmem:[%s831_s1 + $0x28] sm:$0xff]  }
   0xc   : > { %694 = vset.pattern.permute.xlu1 %v713_v1  ;;  %693 = vset.pattern.permute.xlu0 %v713_v1  ;;  %s637_s16 = sshll.u32 %s835_s13, 4  ;;  %v701_v2 = vld [vmem:[%s831_s1] sm:$0xff]   ;;  %v702_v8 = vld [vmem:[%s831_s1 + $0x8] sm:$0xff]   ;;  %v443_v9 = vld [vmem:[%s832_s2 + $0x18] sm:$0xff]  ;;  %s638_s26 = sshll.u32 %s835_s13, 5  ;;  %vm528_vm1 = vcmask 134144  }
   0xd   : > { %675 = vmatprep.mubr.msk.bf16.mxu1 %vm216_vm0, %v697_v0  ;;  %s165_s21 = scalar_lea.vmem %s830_s0, %s637_s16  ;;  %663 = vmatprep.mubr.msk.bf16.mxu0 %vm216_vm0, %v701_v2  ;;  %v440_v6 = vld [vmem:[%s832_s2] sm:$0xff]  ;;  %v441_v10 = vld [vmem:[%s832_s2 + $0x8] sm:$0xff]  ;;  %v699_v11 = vld [vmem:[%s831_s1 + $0x30] sm:$0xff]   ;;  %s809_s29 = scalar_lea.vmem %s833_s3, %s638_s26 }
   0xe   : > { %v695_v3 = vld [vmem:[%s165_s21 + $0x8] sm:$0xff]   ;;  %v696_v4 = vld [vmem:[%s165_s21] sm:$0xff]   ;;  %460 = vperm.xlu1 %694, %v442_v5   ;;  %450 = vperm.xlu0 %693, %v440_v6   ;;  %v703_v12 = vld [vmem:[%s831_s1 + $0x10] sm:$0xff]  }
   0xf   : > { %671 = vmatprep.subr.bf16.mxu1 %v695_v3  ;;  %659 = vmatprep.subr.bf16.mxu0 %v695_v3  ;;  %v445_v13 = vld [vmem:[%s832_s2 + $0x28] sm:$0xff]  ;;  %v444_v14 = vld [vmem:[%s832_s2 + $0x20] sm:$0xff]  ;;  %v700_v15 = vld [vmem:[%s831_s1 + $0x38] sm:$0xff]  }
  0x10   : > { %672 = vmatpush3.bf16.msra.mxu1 %v695_v3  ;;  %660 = vmatpush3.bf16.msra.mxu0 %v695_v3  ;;  %v704_v16 = vld [vmem:[%s831_s1 + $0x18] sm:$0xff]   ;;  %v446_v18 = vld [vmem:[%s832_s2 + $0x30] sm:$0xff] }
  0x11   : > { %673 = vmatprep.subr.bf16.mxu1 %v696_v4  ;;  %661 = vmatprep.subr.bf16.mxu0 %v696_v4  ;;  %v447_v17 = vld [vmem:[%s832_s2 + $0x38] sm:$0xff] }
  0x12   : > { %465 = vperm.xlu1 %694, %v443_v9   ;;  %455 = vperm.xlu0 %693, %v441_v10  }
  0x14   : > { %674 = vmatpush3.bf16.msra.mxu1 %v696_v4  ;;  %662 = vmatpush3.bf16.msra.mxu0 %v696_v4 }
  0x16   : > { %475 = vperm.xlu1 %694, %v445_v13   ;;  %470 = vperm.xlu0 %693, %v444_v14  }
  0x17   : > { %676 = vmatmul.mubr.msk.bf16.vlgmr.msra.gmra.mxu1 %vm216_vm0, %v698_v7  ;;  %664 = vmatmul.mubr.msk.bf16.vlgmr.msra.gmra.mxu0 %vm216_vm0, %v702_v8 }
  0x18   : > { %679 = vmatprep.mubr.msk.bf16.mxu1 %vm216_vm0, %v699_v11  ;;  %667 = vmatprep.mubr.msk.bf16.mxu0 %vm216_vm0, %v703_v12 }
  0x1a   : > { %485 = vperm.xlu1 %694, %v447_v17   ;;  %480 = vperm.xlu0 %693, %v446_v18  }
  0x1f   : > { %680 = vmatmul.mubr.msk.bf16.gmra.mxu1 %vm216_vm0, %v700_v15  ;;  %668 = vmatmul.mubr.msk.bf16.gmra.mxu0 %vm216_vm0, %v704_v16 }
  0x89   : > { %v451_v27 = vpop.permute.xlu0 %450  ;;  %v461_v28 = vpop.permute.xlu1 %460 }
  0x8d   : > { %v456_v29 = vpop.permute.xlu0 %455  ;;  %v466_v31 = vpop.permute.xlu1 %465 }
  0x91   : > { %v471_v33 = vpop.permute.xlu0 %470  ;;  %v476_v35 = vpop.permute.xlu1 %475 }
  0x95   : > { %v481_v36 = vpop.permute.xlu0 %480  ;;  %v486_v38 = vpop.permute.xlu1 %485 }
  0xd7   : > { %v677_v19 = vpop.f32.mrf.mxu1  ;;  %v665_v30 = vpop.f32.mrf.mxu0 }
  0xd8   : > { %412 = vrot.lane.b32.xlu0 %v677_v19, %s714_s25 }
  0xd9   : > { %v369_v20 = vpop.f32.mrf.mxu1  ;;  %v263_v32 = vpop.f32.mrf.mxu0 }
  0xdb   : > { %v678_v21 = vpop.f32.mrf.mxu1  ;;  %v666_v34 = vpop.f32.mrf.mxu0 }
  0xdc   : > { %408 = vrot.lane.b32.xlu0 %v369_v20, %s714_s25  ;;  %414 = vrot.lane.b32.xlu1 %v678_v21, %s714_s25 }
  0xdd   : > { %v372_v22 = vpop.f32.mrf.mxu1  ;;  %v266_v37 = vpop.f32.mrf.mxu0 }
  0xdf   : > { %v681_v23 = vpop.f32.mrf.mxu1  ;;  %v669_v41 = vpop.f32.mrf.mxu0 }
  0xe0   : > { %410 = vrot.lane.b32.xlu1 %v372_v22, %s714_s25 }
  0xe1   : > { %v385_v24 = vpop.f32.mrf.mxu1  ;;  %v279_v48 = vpop.f32.mrf.mxu0 }
  0xe2   : > { %416 = vrot.lane.b32.xlu0 %v385_v24, %s714_s25 }
  0xe3   : > { %v682_v25 = vpop.f32.mrf.mxu1  ;;  %v670_v55 = vpop.f32.mrf.mxu0 }
  0xe5   : > { %v388_v26 = vpop.f32.mrf.mxu1  ;;  %v282_v61 = vpop.f32.mrf.mxu0 }
  0xe6   : > { %420 = vrot.lane.b32.xlu0 %v681_v23, %s714_s25  ;;  %418 = vrot.lane.b32.xlu1 %v388_v26, %s714_s25 }
  0xea   : > { %422 = vrot.lane.b32.xlu1 %v682_v25, %s714_s25 }
 0x14a   : > { %v413_v39 = vpop.permute.xlu0 %412 }
 0x14b   : > { %v434_v40 = vadd.f32 %v665_v30, %v413_v39 }
 0x14d   : > { %v490_v42 = vadd.f32 %v461_v28, %v434_v40 }
 0x14e   : > { %v409_v43 = vpop.permute.xlu0 %408  ;;  %v415_v44 = vpop.permute.xlu1 %414 }
 0x14f   : > { %v641_v45 = vpack.c.bf16 %v490_v42, %v490_v42  ;;  %v432_v46 = vadd.f32 %v409_v43, %v263_v32  ;;  %v435_v47 = vadd.f32 %v666_v34, %v415_v44 }
 0x151   : > { %531 = vst.msk [vmem:[%s809_s29 + $0x8] sm:$0xf] %vm528_vm1, %v641_v45  ;;  %v488_v49 = vadd.f32 %v451_v27, %v432_v46  ;;  %v491_v50 = vadd.f32 %v466_v31, %v435_v47 }
 0x152   : > { %v411_v51 = vpop.permute.xlu1 %410 }
 0x153   : > { %v639_v52 = vpack.c.bf16 %v488_v49, %v488_v49  ;;  %v642_v53 = vpack.c.bf16 %v491_v50, %v491_v50  ;;  %v433_v54 = vadd.f32 %v411_v51, %v266_v37 }
 0x154   : > { %v417_v56 = vpop.permute.xlu0 %416 }
 0x155   : > { %529 = vst.msk [vmem:[%s809_s29] sm:$0xf] %vm528_vm1, %v639_v52  ;;  %532 = vst.msk [vmem:[%s809_s29 + $0xc] sm:$0xf] %vm528_vm1, %v642_v53  ;;  %v489_v57 = vadd.f32 %v456_v29, %v433_v54  ;;  %v436_v58 = vadd.f32 %v417_v56, %v279_v48 }
 0x157   : > { %v640_v59 = vpack.c.bf16 %v489_v57, %v489_v57  ;;  %v492_v60 = vadd.f32 %v471_v33, %v436_v58 }
 0x158   : > { %v421_v62 = vpop.permute.xlu0 %420  ;;  %v419_v63 = vpop.permute.xlu1 %418 }
 0x159   : > { %530 = vst.msk [vmem:[%s809_s29 + $0x4] sm:$0xf] %vm528_vm1, %v640_v59  ;;  %v643_v0 = vpack.c.bf16 %v492_v60, %v492_v60  ;;  %v438_v1 = vadd.f32 %v669_v41, %v421_v62  ;;  %v437_v2 = vadd.f32 %v419_v63, %v282_v61 }
 0x15b   : > { %533 = vst.msk [vmem:[%s809_s29 + $0x10] sm:$0xf] %vm528_vm1, %v643_v0  ;;  %v494_v3 = vadd.f32 %v481_v36, %v438_v1  ;;  %v493_v4 = vadd.f32 %v476_v35, %v437_v2 }
 0x15c   : > { %v423_v5 = vpop.permute.xlu1 %422 }
 0x15d   : > { %v645_v6 = vpack.c.bf16 %v494_v3, %v494_v3  ;;  %v644_v7 = vpack.c.bf16 %v493_v4, %v493_v4  ;;  %v439_v8 = vadd.f32 %v670_v55, %v423_v5 }
 0x15f   : > { %535 = vst.msk [vmem:[%s809_s29 + $0x18] sm:$0xf] %vm528_vm1, %v645_v6  ;;  %534 = vst.msk [vmem:[%s809_s29 + $0x14] sm:$0xf] %vm528_vm1, %v644_v7  ;;  %v495_v9 = vadd.f32 %v486_v38, %v439_v8 }
 0x161   : > { %v646_v10 = vpack.c.bf16 %v495_v9, %v495_v9 }
 0x163   : > { %536 = vst.msk [vmem:[%s809_s29 + $0x1c] sm:$0xf] %vm528_vm1, %v646_v10 }
 0x164 PF: > { %s13_s12 = sadd.s32 1, %s711_s12  }
 0x165   : > { %p10_p4 = scmp.ge.s32.totalorder %s13_s12, 4  }
 0x167   :  { %12 = sbr.rel (!%p10_p4) target bundleno = 1 (0x1), region = 63 }

// kernel: tile.20
= control target key start
LH: loop header
LB: loop body
LE: loop exit
PB: predicated region body
PF: predicated region fallthrough
CT: control target
= control target key end

     0   :  { %s22_s0 = inlined_call_operand.vmem [shape: f32[4], index: 0, kind: input, shape index: {}]   ;;  %s23_s1 = inlined_call_operand.vmem [shape: f32[2,4], index: 1, kind: output, shape index: {}]  }
   0x1   :  { %v4_v0 = vld [vmem:[%s22_s0] ss:$0 sm:$0xff] }
   0x2   :  { %5 = vst [vmem:[%s23_s1] sm:$0x3] %v4_v0 }

// kernel: tile.1
= control target key start
LH: loop header
LB: loop body
LE: loop exit
PB: predicated region body
PF: predicated region fallthrough
CT: control target
= control target key end

     0   :  { %s35_s8 = smov 125   ;;  %vm8_vm0 = vcmask 7168   ;;  %s36_s11 = smov 126   ;;  %s62_s0 = inlined_call_operand.vmem [shape: f32[2,4], index: 0, kind: input, shape index: {}]   ;;  %s63_s1 = inlined_call_operand.vmem [shape: f32[8,1], index: 1, kind: output, shape index: {}]  }
   0x1   :  { %v5_v0 = vld [vmem:[%s62_s0] sm:$0x3]  ;;  %s34_s0 = smov 127  }
   0x2   :  { %6 = vst [vmem:[#allocation0] sm:$0x3] %v5_v0 }
   0x9   :  { %v10_v1 = vld [vmem:[#allocation0] sm:$0x3]  }
   0xa   :  { %v22_v2 = vld [vmem:[#allocation0] sm:$0x3]   ;;  %11 = vrot.lane.b32.xlu0 %v10_v1, %s34_s0 }
   0xb   :  { %23 = vrot.lane.b32.xlu1 %v22_v2, %s35_s8  ;;  %v7_v3 = vld [vmem:[#allocation0] sm:$0x3]  }
   0xc   :  { %v16_v4 = vld [vmem:[#allocation0] sm:$0x3]   ;;  %9 = vst.msk [vmem:[%s63_s1] ss:$4 sm:$0x3] %vm8_vm0, %v7_v3  }
   0xe   :  { %17 = vrot.lane.b32.xlu0 %v16_v4, %s36_s11 }
  0x7c   :  { %v12_v5 = vpop.permute.xlu0 %11  }
  0x7d   :  { %v24_v6 = vpop.permute.xlu1 %23   ;;  %28 = vst.msk [vmem:[%s63_s1 + $0x1] ss:$4 sm:$0x3] %vm8_vm0, %v12_v5  }
  0x7e   :  { %30 = vst.msk [vmem:[%s63_s1 + $0x3] ss:$4 sm:$0x3] %vm8_vm0, %v24_v6  }
  0x80   :  { %v18_v7 = vpop.permute.xlu0 %17  }
  0x81   :  { %29 = vst.msk [vmem:[%s63_s1 + $0x2] ss:$4 sm:$0x3] %vm8_vm0, %v18_v7  }

// kernel: _lambda_.6
= control target key start
LH: loop header
LB: loop body
LE: loop exit
PB: predicated region body
PF: predicated region fallthrough
CT: control target
= control target key end

     0   :  { %s1345_s18 = smov 0   ;;  %s1553_s0 = inlined_call_operand.vmem [shape: bf16[2,32,16], index: 0, kind: input, shape index: {}]   ;;  %s1554_s1 = inlined_call_operand.vmem [shape: bf16[2,3,32,32], index: 1, kind: input, shape index: {}]   ;;  %s1555_s2 = inlined_call_operand.vmem [shape: f32[2,32,1], index: 2, kind: input, shape index: {}]   ;;  %s1556_s3 = inlined_call_operand.vmem [shape: bf16[2,32,32], index: 3, kind: input, shape index: {}]   ;;  %s1557_s4 = inlined_call_operand.vmem [shape: f32[2,32,1], index: 4, kind: input, shape index: {}]   ;;  %s1558_s5 = inlined_call_operand.vmem [shape: bf16[2,32,16], index: 5, kind: output, shape index: {}]  }
   0x1 LB: > { %s1093_s19 = sadd.s32 4294967295, %s1310_s18   ;;  %p1097_p0 = scmp.ge.s32.totalorder %s1310_s18, 1  ;;  %s1310_s18 = sphi %s1345_s18, %s15_s18  }
   0x2   : > { %p187_p1 = scmp.lt.s32.totalorder %s1310_s18, 3 }
   0x4   : > { %p188_p2 = pnand %p1097_p0, %p187_p1 }
   0x5   : > { %p215_p3 = scmp.lt.s32.totalorder (!%p188_p2), %s1093_s19, 1  ;;  %s1313_s21 = smov (!%p188_p2), 1  }
   0x6   : > { %191 = sbr.rel (%p188_p2) target bundleno = 1118 (0x45e), region = 40  ;;  %s1314_s22 = smov (!%p188_p2), 127  }
   0xb   : > { %v1288_v0 = vld [vmem:[%s1554_s1] sm:$0xff]   ;;  %vm262_vm0 = vcmask 261120   ;;  %s1560_s19 = smov (!%p215_p3, %s1093_s19), 1  ;;  %v1312_v2 = vmov 0   ;;  %v385_v5 = vld [vmem:[%s1555_s2 + $0x10] sm:$0xff]  ;;  %v386_v11 = vld [vmem:[%s1555_s2 + $0x18] sm:$0xff] }
   0xc   : > { %v1289_v1 = vld [vmem:[%s1554_s1 + $0x20] sm:$0xff]   ;;  %1215 = vmatprep.mubr.msk.bf16.mxu0 %vm262_vm0, %v1288_v0  ;;  %s1164_s24 = sshll.u32 %s1560_s19, 4  ;;  %1287 = vset.pattern.permute.xlu1 %v1312_v2  ;;  %v384_v12 = vld [vmem:[%s1555_s2 + $0x8] sm:$0xff]  ;;  %v1292_v21 = vld [vmem:[%s1554_s1 + $0x10] sm:$0xff]   ;;  %vm488_vm1 = vcmask 7168   ;;  %vm513_vm2 = vcmask 121856  }
   0xd   : > { %1223 = vmatprep.mubr.msk.bf16.mxu1 %vm262_vm0, %v1289_v1  ;;  %1286 = vset.pattern.permute.xlu0 %v1312_v2  ;;  %s219_s27 = scalar_lea.vmem %s1553_s0, %s1164_s24  ;;  %v383_v10 = vld [vmem:[%s1555_s2] sm:$0xff]  ;;  %v1290_v19 = vld [vmem:[%s1554_s1 + $0x8] sm:$0xff]   ;;  %v1293_v22 = vld [vmem:[%s1554_s1 + $0x18] sm:$0xff]   ;;  %s224_s28 = scalar_lea.vmem %s1558_s5, %s1164_s24  ;;  %vm1033_vm3 = vcmask 125952  }
   0xe   : > { %v1369_v3 = vld [vmem:[%s219_s27 + $0x8] sm:$0xff]   ;;  %v1371_v4 = vld [vmem:[%s219_s27] sm:$0xff]   ;;  %399 = vperm.xlu0 %1286, %v385_v5   ;;  %389 = vperm.xlu1 %1287, %v383_v10   ;;  %v534_v31 = vld [vmem:[%s1557_s4 + $0x10] sm:$0xff] }
   0xf   : > { %v1176_v6 = vunpack.c.l.bf16 %v1369_v3  ;;  %v1177_v7 = vunpack.c.h.bf16 %v1369_v3  ;;  %v1172_v8 = vunpack.c.l.bf16 %v1371_v4  ;;  %v1173_v9 = vunpack.c.h.bf16 %v1371_v4  ;;  %v1291_v20 = vld [vmem:[%s1554_s1 + $0x28] sm:$0xff]   ;;  %v1294_v30 = vld [vmem:[%s1556_s3] sm:$0xff]   ;;  %v535_v34 = vld [vmem:[%s1557_s4 + $0x18] sm:$0xff] }
  0x10   : > { %v532_v33 = vld [vmem:[%s1557_s4] sm:$0xff]  ;;  %v1140_v35 = vld [vmem:[%s1555_s2 + $0x30] sm:$0xff]  ;;  %v533_v36 = vld [vmem:[%s1557_s4 + $0x8] sm:$0xff] }
  0x11   : > { %v236_v13 = vmax.f32 %v1176_v6, 0.0  ;;  %v237_v14 = vmax.f32 %v1177_v7, 0.0  ;;  %v234_v15 = vmax.f32 %v1172_v8, 0.0  ;;  %v235_v16 = vmax.f32 %v1173_v9, 0.0  ;;  %v1138_v37 = vld [vmem:[%s1555_s2 + $0x20] sm:$0xff]  ;;  %v1141_v38 = vld [vmem:[%s1555_s2 + $0x38] sm:$0xff] }
  0x12   : > { %404 = vperm.xlu0 %1286, %v386_v11   ;;  %394 = vperm.xlu1 %1287, %v384_v12   ;;  %v1139_v39 = vld [vmem:[%s1555_s2 + $0x28] sm:$0xff]  ;;  %v1298_v3 = vld [vmem:[%s1554_s1 + $0x38] sm:$0xff]  }
  0x13   : > { %v239_v17 = vpack.c.bf16 %v237_v14, %v236_v13  ;;  %v238_v18 = vpack.c.bf16 %v235_v16, %v234_v15  ;;  %v1299_v4 = vld [vmem:[%s1554_s1 + $0x58] sm:$0xff]  }
  0x15   : > { %1211 = vmatprep.subr.bf16.mxu0 %v239_v17  ;;  %1219 = vmatprep.subr.bf16.mxu1 %v239_v17 }
  0x16   : > { %1212 = vmatpush3.bf16.msra.mxu0 %v239_v17  ;;  %1220 = vmatpush3.bf16.msra.mxu1 %v239_v17 }
  0x17   : > { %1213 = vmatprep.subr.bf16.mxu0 %v238_v18  ;;  %1221 = vmatprep.subr.bf16.mxu1 %v238_v18 }
  0x1a   : > { %1214 = vmatpush3.bf16.msra.mxu0 %v238_v18  ;;  %1222 = vmatpush3.bf16.msra.mxu1 %v238_v18 }
  0x1b   : > { %1227 = vmatprep.subr.bf16.mxu0 %v239_v17 }
  0x1d   : > { %1216 = vmatmul.mubr.msk.bf16.vlgmr.msra.gmra.mxu0 %vm262_vm0, %v1290_v19  ;;  %1224 = vmatmul.mubr.msk.bf16.vlgmr.msra.gmra.mxu1 %vm262_vm0, %v1291_v20 }
  0x1e   : > { %1228 = vmatpush3.bf16.msra.mxu0 %v239_v17  ;;  %1231 = vmatprep.mubr.msk.bf16.mxu0 %vm262_vm0, %v1292_v21 }
  0x1f   : > { %1229 = vmatprep.subr.bf16.mxu0 %v238_v18  ;;  %1239 = vmatprep.mubr.msk.bf16.mxu1 %vm262_vm0, %v1294_v30 }
  0x22   : > { %1230 = vmatpush3.bf16.msra.mxu0 %v238_v18 }
  0x25   : > { %1232 = vmatmul.mubr.msk.bf16.vlgmr.msra.gmra.mxu0 %vm262_vm0, %v1293_v22 }
  0x89   : > { %v400_v40 = vpop.permute.xlu0 %399  ;;  %v390_v41 = vpop.permute.xlu1 %389 }
  0x8d   : > { %v405_v42 = vpop.permute.xlu0 %404  ;;  %v395_v44 = vpop.permute.xlu1 %394 }
  0xdd   : > { %v1217_v23 = vpop.f32.mrf.mxu0  ;;  %v1225_v24 = vpop.f32.mrf.mxu1 }
  0xde   : > { %480 = vrot.lane.b32.xlu0 %v1217_v23, %s1313_s21 }
  0xdf   : > { %v303_v25 = vpop.f32.mrf.mxu0  ;;  %v368_v26 = vpop.f32.mrf.mxu1 }
  0xe1   : > { %v1218_v27 = vpop.f32.mrf.mxu0  ;;  %v1226_v28 = vpop.f32.mrf.mxu1 }
  0xe2   : > { %505 = vrot.lane.b32.xlu0 %v1225_v24, %s1314_s22  ;;  %482 = vrot.lane.b32.xlu1 %v1218_v27, %s1313_s21  ;;  %v1295_v24 = vld [vmem:[%s1556_s3 + $0x8] sm:$0xff]  }
  0xe3   : > { %v306_v29 = vpop.f32.mrf.mxu0  ;;  %v371_v32 = vpop.f32.mrf.mxu1 }
  0xe5   : > { %v1233_v43 = vpop.f32.mrf.mxu0 }
  0xe6   : > { %476 = vrot.lane.b32.xlu0 %v303_v25, %s1313_s21  ;;  %507 = vrot.lane.b32.xlu1 %v1226_v28, %s1314_s22  ;;  %v466_v48 = vadd.f32 %v1233_v43, %v400_v40  ;;  %v1296_v25 = vld [vmem:[%s1554_s1 + $0x30] sm:$0xff]  }
  0xe7   : > { %v457_v46 = vpop.f32.mrf.mxu0  ;;  %1247 = vmatprep.mubr.msk.bf16.mxu0 %vm262_vm0, %v1296_v25 }
  0xe8   : > { %v458_v0 = vadd.f32 %v457_v46, %v390_v41 }
  0xe9   : > { %v1234_v51 = vpop.f32.mrf.mxu0 }
  0xea   : > { %501 = vrot.lane.b32.xlu0 %v368_v26, %s1314_s22  ;;  %478 = vrot.lane.b32.xlu1 %v306_v29, %s1313_s21  ;;  %v469_v54 = vadd.f32 %v1234_v51, %v405_v42  ;;  %v1297_v26 = vld [vmem:[%s1554_s1 + $0x50] sm:$0xff]  }
  0xeb   : > { %v460_v62 = vpop.f32.mrf.mxu0 }
  0xec   : > { %v461_v13 = vadd.f32 %v460_v62, %v395_v44 }
  0xee   : > { %548 = vperm.xlu0 %1286, %v534_v31   ;;  %503 = vrot.lane.b32.xlu1 %v371_v32, %s1314_s22 }
  0xf2   : > { %538 = vperm.xlu0 %1286, %v532_v33   ;;  %553 = vperm.xlu1 %1287, %v535_v34  }
  0xf6   : > { %791 = vperm.xlu0 %1286, %v1140_v35   ;;  %543 = vperm.xlu1 %1287, %v533_v36  }
  0xfa   : > { %781 = vperm.xlu0 %1286, %v1138_v37   ;;  %796 = vperm.xlu1 %1287, %v1141_v38  }
  0xfe   : > { %786 = vperm.xlu1 %1287, %v1139_v39  }
 0x150   : > { %v481_v45 = vpop.permute.xlu0 %480 }
 0x151   : > { %v491_v47 = vsel %vm488_vm1, 0.0, %v481_v45 }
 0x152   : > { %v495_v55 = vadd.f32 %v491_v47, %v466_v48 }
 0x154   : > { %v506_v49 = vpop.permute.xlu0 %505  ;;  %v483_v50 = vpop.permute.xlu1 %482 }
 0x155   : > { %v516_v52 = vsel %vm513_vm2, %v506_v49, 0.0  ;;  %v492_v53 = vsel %vm488_vm1, 0.0, %v483_v50 }
 0x156   : > { %v520_v56 = vadd.f32 %v516_v52, %v495_v55  ;;  %v496_v57 = vadd.f32 %v492_v53, %v469_v54  ;;  %v1302_v54 = vld [vmem:[%s1556_s3 + $0x10] sm:$0xff]   ;;  %v1150_v55 = vld [vmem:[%s1557_s4 + $0x20] sm:$0xff] }
 0x158   : > { %v477_v58 = vpop.permute.xlu0 %476  ;;  %v508_v59 = vpop.permute.xlu1 %507  ;;  %v524_v1 = vmax.f32 %v520_v56, 0.0 }
 0x159   : > { %v517_v60 = vsel %vm513_vm2, %v508_v59, 0.0  ;;  %v489_v63 = vsel %vm488_vm1, 0.0, %v477_v58  ;;  %v1151_v58 = vld [vmem:[%s1557_s4 + $0x28] sm:$0xff]  ;;  %v1153_v59 = vld [vmem:[%s1557_s4 + $0x38] sm:$0xff] }
 0x15a   : > { %v521_v61 = vadd.f32 %v517_v60, %v496_v57  ;;  %v493_v14 = vadd.f32 %v489_v63, %v458_v0  ;;  %v1152_v57 = vld [vmem:[%s1557_s4 + $0x30] sm:$0xff] }
 0x15c   : > { %v525_v2 = vmax.f32 %v521_v61, 0.0  ;;  %v502_v5 = vpop.permute.xlu0 %501  ;;  %v479_v10 = vpop.permute.xlu1 %478 }
 0x15d   : > { %v514_v11 = vsel %vm513_vm2, %v502_v5, 0.0  ;;  %v490_v12 = vsel %vm488_vm1, 0.0, %v479_v10 }
 0x15e   : > { %v527_v15 = vpack.c.bf16 %v525_v2, %v524_v1  ;;  %v518_v16 = vadd.f32 %v514_v11, %v493_v14  ;;  %v494_v17 = vadd.f32 %v490_v12, %v461_v13 }
 0x160   : > { %v504_v18 = vpop.permute.xlu1 %503  ;;  %1235 = vmatprep.subr.bf16.mxu1 %v527_v15  ;;  %v522_v21 = vmax.f32 %v518_v16, 0.0 }
 0x161   : > { %v515_v19 = vsel %vm513_vm2, %v504_v18, 0.0  ;;  %1236 = vmatpush3.bf16.msra.mxu1 %v527_v15 }
 0x162   : > { %v519_v20 = vadd.f32 %v515_v19, %v494_v17 }
 0x164   : > { %v523_v22 = vmax.f32 %v519_v20, 0.0 }
 0x166   : > { %v526_v23 = vpack.c.bf16 %v523_v22, %v522_v21 }
 0x168   : > { %1237 = vmatprep.subr.bf16.mxu1 %v526_v23 }
 0x169   : > { %1238 = vmatpush3.bf16.msra.mxu1 %v526_v23  ;;  %v549_v27 = vpop.permute.xlu0 %548 }
 0x16c   : > { %1240 = vmatmul.mubr.msk.bf16.vlgmr.msra.gmra.mxu1 %vm262_vm0, %v1295_v24 }
 0x16d   : > { %1255 = vmatprep.mubr.msk.bf16.mxu1 %vm262_vm0, %v1297_v26  ;;  %v554_v28 = vpop.permute.xlu1 %553  ;;  %v539_v31 = vpop.permute.xlu0 %538 }
 0x171   : > { %v544_v37 = vpop.permute.xlu1 %543  ;;  %v792_v60 = vpop.permute.xlu0 %791 }
 0x175   : > { %v797_v61 = vpop.permute.xlu1 %796  ;;  %v782_v63 = vpop.permute.xlu0 %781 }
 0x179   : > { %v787_v1 = vpop.permute.xlu1 %786 }
 0x22c   : > { %v1241_v29 = vpop.f32.mrf.mxu1 }
 0x22d   : > { %v615_v30 = vadd.f32 %v1241_v29, %v549_v27 }
 0x22e   : > { %v606_v32 = vpop.f32.mrf.mxu1 }
 0x22f   : > { %v607_v33 = vadd.f32 %v606_v32, %v539_v31  ;;  %v1471_v35 = vadd.f32 %v1176_v6, %v615_v30 }
 0x230   : > { %v1242_v34 = vpop.f32.mrf.mxu1 }
 0x231   : > { %v618_v36 = vadd.f32 %v1242_v34, %v554_v28  ;;  %v1475_v39 = vadd.f32 %v1172_v8, %v607_v33  ;;  %v627_v42 = vmax.f32 %v1471_v35, 0.0 }
 0x232   : > { %v609_v38 = vpop.f32.mrf.mxu1 }
 0x233   : > { %v1479_v40 = vadd.f32 %v1177_v7, %v618_v36  ;;  %v610_v41 = vadd.f32 %v609_v38, %v544_v37  ;;  %v625_v44 = vmax.f32 %v1475_v39, 0.0  ;;  %v1300_v7 = vld [vmem:[%s1554_s1 + $0x40] sm:$0xff]  }
 0x235   : > { %v628_v43 = vmax.f32 %v1479_v40, 0.0  ;;  %v1485_v6 = vadd.f32 %v1173_v9, %v610_v41  ;;  %v1301_v9 = vld [vmem:[%s1554_s1 + $0x48] sm:$0xff]  }
 0x237   : > { %v630_v45 = vpack.c.bf16 %v628_v43, %v627_v42  ;;  %v626_v46 = vmax.f32 %v1485_v6, 0.0 }
 0x239   : > { %v629_v8 = vpack.c.bf16 %v626_v46, %v625_v44  ;;  %1243 = vmatprep.subr.bf16.mxu0 %v630_v45  ;;  %1251 = vmatprep.subr.bf16.mxu1 %v630_v45 }
 0x23a   : > { %1244 = vmatpush3.bf16.msra.mxu0 %v630_v45  ;;  %1252 = vmatpush3.bf16.msra.mxu1 %v630_v45 }
 0x23b   : > { %1245 = vmatprep.subr.bf16.mxu0 %v629_v8  ;;  %1253 = vmatprep.subr.bf16.mxu1 %v629_v8 }
 0x23e   : > { %1246 = vmatpush3.bf16.msra.mxu0 %v629_v8  ;;  %1254 = vmatpush3.bf16.msra.mxu1 %v629_v8 }
 0x23f   : > { %1259 = vmatprep.subr.bf16.mxu0 %v630_v45 }
 0x241   : > { %1248 = vmatmul.mubr.msk.bf16.vlgmr.msra.gmra.mxu0 %vm262_vm0, %v1298_v3  ;;  %1256 = vmatmul.mubr.msk.bf16.vlgmr.msra.gmra.mxu1 %vm262_vm0, %v1299_v4 }
 0x242   : > { %1260 = vmatpush3.bf16.msra.mxu0 %v630_v45  ;;  %1263 = vmatprep.mubr.msk.bf16.mxu0 %vm262_vm0, %v1300_v7 }
 0x243   : > { %1261 = vmatprep.subr.bf16.mxu0 %v629_v8  ;;  %1271 = vmatprep.mubr.msk.bf16.mxu1 %vm262_vm0, %v1302_v54 }
 0x246   : > { %1262 = vmatpush3.bf16.msra.mxu0 %v629_v8  ;;  %v1303_v8 = vld [vmem:[%s1556_s3 + $0x18] sm:$0xff]  }
 0x249   : > { %1264 = vmatmul.mubr.msk.bf16.vlgmr.msra.gmra.mxu0 %vm262_vm0, %v1301_v9 }
 0x301   : > { %v1249_v47 = vpop.f32.mrf.mxu0  ;;  %v1257_v48 = vpop.f32.mrf.mxu1 }
 0x302   : > { %872 = vrot.lane.b32.xlu0 %v1249_v47, %s1313_s21 }
 0x303   : > { %v694_v49 = vpop.f32.mrf.mxu0  ;;  %v759_v50 = vpop.f32.mrf.mxu1 }
 0x305   : > { %v1250_v51 = vpop.f32.mrf.mxu0  ;;  %v1258_v52 = vpop.f32.mrf.mxu1 }
 0x306   : > { %896 = vrot.lane.b32.xlu0 %v1257_v48, %s1314_s22  ;;  %874 = vrot.lane.b32.xlu1 %v1250_v51, %s1313_s21 }
 0x307   : > { %v697_v53 = vpop.f32.mrf.mxu0  ;;  %v762_v56 = vpop.f32.mrf.mxu1 }
 0x309   : > { %v1265_v62 = vpop.f32.mrf.mxu0 }
 0x30a   : > { %868 = vrot.lane.b32.xlu0 %v694_v49, %s1313_s21  ;;  %898 = vrot.lane.b32.xlu1 %v1258_v52, %s1314_s22  ;;  %v858_v11 = vadd.f32 %v1265_v62, %v792_v60 }
 0x30b   : > { %v849_v0 = vpop.f32.mrf.mxu0 }
 0x30c   : > { %v850_v26 = vadd.f32 %v849_v0, %v782_v63 }
 0x30d   : > { %v1266_v5 = vpop.f32.mrf.mxu0 }
 0x30e   : > { %892 = vrot.lane.b32.xlu0 %v759_v50, %s1314_s22  ;;  %870 = vrot.lane.b32.xlu1 %v697_v53, %s1313_s21  ;;  %v861_v16 = vadd.f32 %v1266_v5, %v797_v61 }
 0x30f   : > { %v852_v24 = vpop.f32.mrf.mxu0 }
 0x310   : > { %v853_v33 = vadd.f32 %v852_v24, %v787_v1 }
 0x312   : > { %930 = vperm.xlu0 %1286, %v1150_v55   ;;  %894 = vrot.lane.b32.xlu1 %v762_v56, %s1314_s22 }
 0x316   : > { %940 = vperm.xlu0 %1286, %v1152_v57   ;;  %935 = vperm.xlu1 %1287, %v1151_v58  }
 0x31a   : > { %945 = vperm.xlu1 %1287, %v1153_v59  }
 0x374   : > { %v873_v2 = vpop.permute.xlu0 %872 }
 0x375   : > { %v882_v10 = vsel %vm488_vm1, 0.0, %v873_v2 }
 0x376   : > { %v886_v17 = vadd.f32 %v882_v10, %v858_v11 }
 0x378   : > { %v897_v12 = vpop.permute.xlu0 %896  ;;  %v875_v13 = vpop.permute.xlu1 %874 }
 0x379   : > { %v906_v14 = vsel %vm513_vm2, %v897_v12, 0.0  ;;  %v883_v15 = vsel %vm488_vm1, 0.0, %v875_v13 }
 0x37a   : > { %v910_v18 = vadd.f32 %v906_v14, %v886_v17  ;;  %v887_v19 = vadd.f32 %v883_v15, %v861_v16 }
 0x37c   : > { %v869_v20 = vpop.permute.xlu0 %868  ;;  %v899_v21 = vpop.permute.xlu1 %898  ;;  %v914_v27 = vmax.f32 %v910_v18, 0.0 }
 0x37d   : > { %v907_v22 = vsel %vm513_vm2, %v899_v21, 0.0  ;;  %v880_v25 = vsel %vm488_vm1, 0.0, %v869_v20 }
 0x37e   : > { %v911_v23 = vadd.f32 %v907_v22, %v887_v19  ;;  %v884_v34 = vadd.f32 %v880_v25, %v850_v26 }
 0x380   : > { %v915_v28 = vmax.f32 %v911_v23, 0.0  ;;  %v893_v29 = vpop.permute.xlu0 %892  ;;  %v871_v30 = vpop.permute.xlu1 %870 }
 0x381   : > { %v904_v31 = vsel %vm513_vm2, %v893_v29, 0.0  ;;  %v881_v32 = vsel %vm488_vm1, 0.0, %v871_v30 }
 0x382   : > { %v917_v36 = vpack.c.bf16 %v915_v28, %v914_v27  ;;  %v908_v37 = vadd.f32 %v904_v31, %v884_v34  ;;  %v885_v38 = vadd.f32 %v881_v32, %v853_v33 }
 0x384   : > { %v895_v41 = vpop.permute.xlu1 %894  ;;  %1267 = vmatprep.subr.bf16.mxu1 %v917_v36  ;;  %v912_v44 = vmax.f32 %v908_v37, 0.0 }
 0x385   : > { %v905_v42 = vsel %vm513_vm2, %v895_v41, 0.0  ;;  %1268 = vmatpush3.bf16.msra.mxu1 %v917_v36 }
 0x386   : > { %v909_v43 = vadd.f32 %v905_v42, %v885_v38 }
 0x388   : > { %v913_v45 = vmax.f32 %v909_v43, 0.0 }
 0x38a   : > { %v916_v46 = vpack.c.bf16 %v913_v45, %v912_v44 }
 0x38c   : > { %1269 = vmatprep.subr.bf16.mxu1 %v916_v46 }
 0x38d   : > { %1270 = vmatpush3.bf16.msra.mxu1 %v916_v46  ;;  %v931_v3 = vpop.permute.xlu0 %930 }
 0x390   : > { %1272 = vmatmul.mubr.msk.bf16.vlgmr.msra.gmra.mxu1 %vm262_vm0, %v1303_v8 }
 0x391   : > { %v936_v4 = vpop.permute.xlu1 %935  ;;  %v941_v7 = vpop.permute.xlu0 %940 }
 0x395   : > { %v946_v51 = vpop.permute.xlu1 %945 }
 0x450   : > { %v1273_v9 = vpop.f32.mrf.mxu1 }
 0x451   : > { %v1007_v47 = vadd.f32 %v1273_v9, %v941_v7 }
 0x452   : > { %v998_v48 = vpop.f32.mrf.mxu1 }
 0x453   : > { %v1015_v49 = vadd.f32 %v1007_v47, %v1471_v35  ;;  %v999_v50 = vadd.f32 %v998_v48, %v931_v3 }
 0x454   : > { %v1274_v52 = vpop.f32.mrf.mxu1 }
 0x455   : > { %v1168_v53 = vpack.c.bf16 %v1015_v49, %v1015_v49  ;;  %v1013_v54 = vadd.f32 %v999_v50, %v1475_v39  ;;  %v1010_v55 = vadd.f32 %v1274_v52, %v946_v51 }
 0x456   : > { %v1001_v56 = vpop.f32.mrf.mxu1 }
 0x457   : > { %1036 = vst.msk [vmem:[%s224_s28 + $0x8] sm:$0xf] %vm1033_vm3, %v1168_v53  ;;  %v1166_v57 = vpack.c.bf16 %v1013_v54, %v1013_v54  ;;  %v1016_v58 = vadd.f32 %v1010_v55, %v1479_v40  ;;  %v1002_v59 = vadd.f32 %v1001_v56, %v936_v4 }
 0x459   : > { %1034 = vst.msk [vmem:[%s224_s28] sm:$0xf] %vm1033_vm3, %v1166_v57  ;;  %v1169_v35 = vpack.c.bf16 %v1016_v58, %v1016_v58  ;;  %v1014_v60 = vadd.f32 %v1002_v59, %v1485_v6 }
 0x45b   : > { %1037 = vst.msk [vmem:[%s224_s28 + $0xc] sm:$0xf] %vm1033_vm3, %v1169_v35  ;;  %v1167_v61 = vpack.c.bf16 %v1014_v60, %v1014_v60 }
 0x45d   : > { %1035 = vst.msk [vmem:[%s224_s28 + $0x4] sm:$0xf] %vm1033_vm3, %v1167_v61 }
 0x45e PF: > { %s15_s18 = sadd.s32 1, %s1310_s18  }
 0x45f   : > { %p12_p4 = scmp.ge.s32.totalorder %s15_s18, 4  }
 0x461   :  { %14 = sbr.rel (!%p12_p4) target bundleno = 1 (0x1), region = 74 }

// kernel: _lambda_.9
= control target key start
LH: loop header
LB: loop body
LE: loop exit
PB: predicated region body
PF: predicated region fallthrough
CT: control target
= control target key end

     0   :  { %s428_s12 = smov 0   ;;  %s458_s0 = inlined_call_operand.vmem [shape: bf16[2,32,34], index: 0, kind: input, shape index: {}]   ;;  %s459_s1 = inlined_call_operand.vmem [shape: bf16[2,8,32], index: 1, kind: input, shape index: {}]   ;;  %s460_s2 = inlined_call_operand.vmem [shape: f32[8,1], index: 2, kind: input, shape index: {}]   ;;  %s461_s3 = inlined_call_operand.vmem [shape: f32[2,8,33], index: 3, kind: output, shape index: {}]  }
   0x1 LB: > { %s343_s13 = sadd.s32 4294967295, %s402_s12   ;;  %p347_p0 = scmp.ge.s32.totalorder %s402_s12, 1  ;;  %s402_s12 = sphi %s428_s12, %s13_s12  }
   0x2   : > { %p137_p1 = scmp.lt.s32.totalorder %s402_s12, 3 }
   0x4   : > { %p138_p2 = pnand %p347_p0, %p137_p1 }
   0x5   : > { %p160_p3 = scmp.lt.s32.totalorder (!%p138_p2), %s343_s13, 1  ;;  %s407_s24 = smov (!%p138_p2), 127  }
   0x6   : > { %141 = sbr.rel (%p138_p2) target bundleno = 335 (0x14f), region = 32 }
   0xb   : > { %v404_v0 = vmov 0.0   ;;  %vm405_vm0 = vmmov 0   ;;  %v281_v1 = vld [vmem:[%s460_s2] sm:$0xff]  ;;  %s463_s13 = smov (!%p160_p3, %s343_s13), 1  ;;  %v406_v2 = vmov 0   ;;  %vm187_vm1 = vcmask 261120  }
   0xc   : > { %373 = vmatprep.subr.bf16.mxu1 %v404_v0  ;;  %377 = vmatprep.mubr.msk.bf16.mxu1 %vm405_vm0, %v404_v0  ;;  %s358_s16 = sshll.u32 %s463_s13, 4  ;;  %v354_v5 = vld [vmem:[%s459_s1 + $0x4] sm:$0xf]  ;;  %v174_v6 = vld [vmem:[%s459_s1] sm:$0xf]  ;;  %s350_s25 = sshll.u32 %s463_s13, 3 }
   0xd   : > { %365 = vmatprep.subr.bf16.mxu0 %v404_v0  ;;  %369 = vmatprep.mubr.msk.bf16.mxu0 %vm405_vm0, %v404_v0  ;;  %s164_s19 = scalar_lea.vmem %s458_s0, %s358_s16  ;;  %s168_s28 = scalar_lea.vmem %s461_s3, %s350_s25  ;;  %vm288_vm2 = vcmask 269312  }
   0xe   : > { %393 = vset.pattern.permute.xlu0 %v406_v2  ;;  %v394_v3 = vld [vmem:[%s164_s19 + $0x8] sm:$0xff]   ;;  %v395_v4 = vld [vmem:[%s164_s19] sm:$0xff]  }
   0xf   : > { %284 = vperm.xlu0 %393, %v281_v1   ;;  %374 = vmatpush3.bf16.msra.mxu1 %v394_v3 }
  0x10   : > { %366 = vmatpush3.bf16.msra.mxu0 %v394_v3  ;;  %375 = vmatprep.subr.bf16.mxu1 %v404_v0 }
  0x11   : > { %367 = vmatprep.subr.bf16.mxu0 %v404_v0 }
  0x13   : > { %376 = vmatpush3.bf16.msra.mxu1 %v395_v4 }
  0x14   : > { %368 = vmatpush3.bf16.msra.mxu0 %v395_v4 }
  0x16   : > { %378 = vmatmul.mubr.msk.bf16.vlgmr.msra.gmra.mxu1 %vm187_vm1, %v354_v5 }
  0x17   : > { %370 = vmatmul.mubr.msk.bf16.vlgmr.msra.gmra.mxu0 %vm187_vm1, %v174_v6 }
  0x8a   : > { %v285_v15 = vpop.permute.xlu0 %284 }
  0xd6   : > { %v270_v7 = vpop.f32.mrf.mxu1 }
  0xd7   : > { %v225_v8 = vpop.f32.mrf.mxu0  ;;  %277 = vrot.lane.b32.xlu0 %v270_v7, %s407_s24 }
  0xd8   : > { %v379_v9 = vpop.f32.mrf.mxu1 }
  0xd9   : > { %v371_v10 = vpop.f32.mrf.mxu0 }
  0xda   : > { %v273_v11 = vpop.f32.mrf.mxu1 }
  0xdb   : > { %v228_v12 = vpop.f32.mrf.mxu0 }
  0xdc   : > { %v380_v13 = vpop.f32.mrf.mxu1 }
  0xdd   : > { %v372_v14 = vpop.f32.mrf.mxu0 }
 0x149   : > { %v278_v16 = vpop.permute.xlu0 %277 }
 0x14a   : > { %v280_v17 = vadd.f32 %v278_v16, %v225_v8 }
 0x14c   : > { %v287_v18 = vadd.f32 %v285_v15, %v280_v17 }
 0x14e   : > { %289 = vst.msk [vmem:[%s168_s28] sm:$0xff] %vm288_vm2, %v287_v18 }
 0x14f PF: > { %s13_s12 = sadd.s32 1, %s402_s12  }
 0x150   : > { %p10_p4 = scmp.ge.s32.totalorder %s13_s12, 4  }
 0x152   :  { %12 = sbr.rel (!%p10_p4) target bundleno = 1 (0x1), region = 63 }

// kernel: _lambda_.8
= control target key start
LH: loop header
LB: loop body
LE: loop exit
PB: predicated region body
PF: predicated region fallthrough
CT: control target
= control target key end

     0   :  { %s1345_s18 = smov 0   ;;  %s1553_s0 = inlined_call_operand.vmem [shape: bf16[2,32,32], index: 0, kind: input, shape index: {}]   ;;  %s1554_s1 = inlined_call_operand.vmem [shape: bf16[2,3,32,32], index: 1, kind: input, shape index: {}]   ;;  %s1555_s2 = inlined_call_operand.vmem [shape: f32[2,32,1], index: 2, kind: input, shape index: {}]   ;;  %s1556_s3 = inlined_call_operand.vmem [shape: bf16[2,32,32], index: 3, kind: input, shape index: {}]   ;;  %s1557_s4 = inlined_call_operand.vmem [shape: f32[2,32,1], index: 4, kind: input, shape index: {}]   ;;  %s1558_s5 = inlined_call_operand.vmem [shape: bf16[2,32,32], index: 5, kind: output, shape index: {}]  }
   0x1 LB: > { %s1093_s19 = sadd.s32 4294967295, %s1310_s18   ;;  %p1097_p0 = scmp.ge.s32.totalorder %s1310_s18, 1  ;;  %s1310_s18 = sphi %s1345_s18, %s15_s18  }
   0x2   : > { %p187_p1 = scmp.lt.s32.totalorder %s1310_s18, 3 }
   0x4   : > { %p188_p2 = pnand %p1097_p0, %p187_p1 }
   0x5   : > { %p215_p3 = scmp.lt.s32.totalorder (!%p188_p2), %s1093_s19, 1  ;;  %s1313_s21 = smov (!%p188_p2), 1  }
   0x6   : > { %191 = sbr.rel (%p188_p2) target bundleno = 1118 (0x45e), region = 40  ;;  %s1314_s22 = smov (!%p188_p2), 127  }
   0xb   : > { %v1288_v0 = vld [vmem:[%s1554_s1] sm:$0xff]   ;;  %vm262_vm0 = vcmask 261120   ;;  %s1560_s19 = smov (!%p215_p3, %s1093_s19), 1  ;;  %v1312_v2 = vmov 0   ;;  %v385_v5 = vld [vmem:[%s1555_s2 + $0x10] sm:$0xff]  ;;  %v386_v11 = vld [vmem:[%s1555_s2 + $0x18] sm:$0xff] }
   0xc   : > { %v1289_v1 = vld [vmem:[%s1554_s1 + $0x20] sm:$0xff]   ;;  %1215 = vmatprep.mubr.msk.bf16.mxu0 %vm262_vm0, %v1288_v0  ;;  %s1164_s24 = sshll.u32 %s1560_s19, 4  ;;  %1287 = vset.pattern.permute.xlu1 %v1312_v2  ;;  %v384_v12 = vld [vmem:[%s1555_s2 + $0x8] sm:$0xff]  ;;  %v1292_v21 = vld [vmem:[%s1554_s1 + $0x10] sm:$0xff]   ;;  %vm488_vm1 = vcmask 7168   ;;  %vm513_vm2 = vcmask 252928  }
   0xd   : > { %1223 = vmatprep.mubr.msk.bf16.mxu1 %vm262_vm0, %v1289_v1  ;;  %1286 = vset.pattern.permute.xlu0 %v1312_v2  ;;  %s219_s27 = scalar_lea.vmem %s1553_s0, %s1164_s24  ;;  %v383_v10 = vld [vmem:[%s1555_s2] sm:$0xff]  ;;  %v1290_v19 = vld [vmem:[%s1554_s1 + $0x8] sm:$0xff]   ;;  %v1293_v22 = vld [vmem:[%s1554_s1 + $0x18] sm:$0xff]   ;;  %s224_s28 = scalar_lea.vmem %s1558_s5, %s1164_s24  ;;  %vm1033_vm3 = vcmask 257024  }
   0xe   : > { %v1369_v3 = vld [vmem:[%s219_s27 + $0x8] sm:$0xff]   ;;  %v1371_v4 = vld [vmem:[%s219_s27] sm:$0xff]   ;;  %399 = vperm.xlu0 %1286, %v385_v5   ;;  %389 = vperm.xlu1 %1287, %v383_v10   ;;  %v534_v31 = vld [vmem:[%s1557_s4 + $0x10] sm:$0xff] }
   0xf   : > { %v1176_v6 = vunpack.c.l.bf16 %v1369_v3  ;;  %v1177_v7 = vunpack.c.h.bf16 %v1369_v3  ;;  %v1172_v8 = vunpack.c.l.bf16 %v1371_v4  ;;  %v1173_v9 = vunpack.c.h.bf16 %v1371_v4  ;;  %v1291_v20 = vld [vmem:[%s1554_s1 + $0x28] sm:$0xff]   ;;  %v1294_v30 = vld [vmem:[%s1556_s3] sm:$0xff]   ;;  %v535_v34 = vld [vmem:[%s1557_s4 + $0x18] sm:$0xff] }
  0x10   : > { %v532_v33 = vld [vmem:[%s1557_s4] sm:$0xff]  ;;  %v1140_v35 = vld [vmem:[%s1555_s2 + $0x30] sm:$0xff]  ;;  %v533_v36 = vld [vmem:[%s1557_s4 + $0x8] sm:$0xff] }
  0x11   : > { %v236_v13 = vmax.f32 %v1176_v6, 0.0  ;;  %v237_v14 = vmax.f32 %v1177_v7, 0.0  ;;  %v234_v15 = vmax.f32 %v1172_v8, 0.0  ;;  %v235_v16 = vmax.f32 %v1173_v9, 0.0  ;;  %v1138_v37 = vld [vmem:[%s1555_s2 + $0x20] sm:$0xff]  ;;  %v1141_v38 = vld [vmem:[%s1555_s2 + $0x38] sm:$0xff] }
  0x12   : > { %404 = vperm.xlu0 %1286, %v386_v11   ;;  %394 = vperm.xlu1 %1287, %v384_v12   ;;  %v1139_v39 = vld [vmem:[%s1555_s2 + $0x28] sm:$0xff]  ;;  %v1298_v3 = vld [vmem:[%s1554_s1 + $0x38] sm:$0xff]  }
  0x13   : > { %v239_v17 = vpack.c.bf16 %v237_v14, %v236_v13  ;;  %v238_v18 = vpack.c.bf16 %v235_v16, %v234_v15  ;;  %v1299_v4 = vld [vmem:[%s1554_s1 + $0x58] sm:$0xff]  }
  0x15   : > { %1211 = vmatprep.subr.bf16.mxu0 %v239_v17  ;;  %1219 = vmatprep.subr.bf16.mxu1 %v239_v17 }
  0x16   : > { %1212 = vmatpush3.bf16.msra.mxu0 %v239_v17  ;;  %1220 = vmatpush3.bf16.msra.mxu1 %v239_v17 }
  0x17   : > { %1213 = vmatprep.subr.bf16.mxu0 %v238_v18  ;;  %1221 = vmatprep.subr.bf16.mxu1 %v238_v18 }
  0x1a   : > { %1214 = vmatpush3.bf16.msra.mxu0 %v238_v18  ;;  %1222 = vmatpush3.bf16.msra.mxu1 %v238_v18 }
  0x1b   : > { %1227 = vmatprep.subr.bf16.mxu0 %v239_v17 }
  0x1d   : > { %1216 = vmatmul.mubr.msk.bf16.vlgmr.msra.gmra.mxu0 %vm262_vm0, %v1290_v19  ;;  %1224 = vmatmul.mubr.msk.bf16.vlgmr.msra.gmra.mxu1 %vm262_vm0, %v1291_v20 }
  0x1e   : > { %1228 = vmatpush3.bf16.msra.mxu0 %v239_v17  ;;  %1231 = vmatprep.mubr.msk.bf16.mxu0 %vm262_vm0, %v1292_v21 }
  0x1f   : > { %1229 = vmatprep.subr.bf16.mxu0 %v238_v18  ;;  %1239 = vmatprep.mubr.msk.bf16.mxu1 %vm262_vm0, %v1294_v30 }
  0x22   : > { %1230 = vmatpush3.bf16.msra.mxu0 %v238_v18 }
  0x25   : > { %1232 = vmatmul.mubr.msk.bf16.vlgmr.msra.gmra.mxu0 %vm262_vm0, %v1293_v22 }
  0x89   : > { %v400_v40 = vpop.permute.xlu0 %399  ;;  %v390_v41 = vpop.permute.xlu1 %389 }
  0x8d   : > { %v405_v42 = vpop.permute.xlu0 %404  ;;  %v395_v44 = vpop.permute.xlu1 %394 }
  0xdd   : > { %v1217_v23 = vpop.f32.mrf.mxu0  ;;  %v1225_v24 = vpop.f32.mrf.mxu1 }
  0xde   : > { %480 = vrot.lane.b32.xlu0 %v1217_v23, %s1313_s21 }
  0xdf   : > { %v303_v25 = vpop.f32.mrf.mxu0  ;;  %v368_v26 = vpop.f32.mrf.mxu1 }
  0xe1   : > { %v1218_v27 = vpop.f32.mrf.mxu0  ;;  %v1226_v28 = vpop.f32.mrf.mxu1 }
  0xe2   : > { %505 = vrot.lane.b32.xlu0 %v1225_v24, %s1314_s22  ;;  %482 = vrot.lane.b32.xlu1 %v1218_v27, %s1313_s21  ;;  %v1295_v24 = vld [vmem:[%s1556_s3 + $0x8] sm:$0xff]  }
  0xe3   : > { %v306_v29 = vpop.f32.mrf.mxu0  ;;  %v371_v32 = vpop.f32.mrf.mxu1 }
  0xe5   : > { %v1233_v43 = vpop.f32.mrf.mxu0 }
  0xe6   : > { %476 = vrot.lane.b32.xlu0 %v303_v25, %s1313_s21  ;;  %507 = vrot.lane.b32.xlu1 %v1226_v28, %s1314_s22  ;;  %v466_v48 = vadd.f32 %v1233_v43, %v400_v40  ;;  %v1296_v25 = vld [vmem:[%s1554_s1 + $0x30] sm:$0xff]  }
  0xe7   : > { %v457_v46 = vpop.f32.mrf.mxu0  ;;  %1247 = vmatprep.mubr.msk.bf16.mxu0 %vm262_vm0, %v1296_v25 }
  0xe8   : > { %v458_v0 = vadd.f32 %v457_v46, %v390_v41 }
  0xe9   : > { %v1234_v51 = vpop.f32.mrf.mxu0 }
  0xea   : > { %501 = vrot.lane.b32.xlu0 %v368_v26, %s1314_s22  ;;  %478 = vrot.lane.b32.xlu1 %v306_v29, %s1313_s21  ;;  %v469_v54 = vadd.f32 %v1234_v51, %v405_v42  ;;  %v1297_v26 = vld [vmem:[%s1554_s1 + $0x50] sm:$0xff]  }
  0xeb   : > { %v460_v62 = vpop.f32.mrf.mxu0 }
  0xec   : > { %v461_v13 = vadd.f32 %v460_v62, %v395_v44 }
  0xee   : > { %548 = vperm.xlu0 %1286, %v534_v31   ;;  %503 = vrot.lane.b32.xlu1 %v371_v32, %s1314_s22 }
  0xf2   : > { %538 = vperm.xlu0 %1286, %v532_v33   ;;  %553 = vperm.xlu1 %1287, %v535_v34  }
  0xf6   : > { %791 = vperm.xlu0 %1286, %v1140_v35   ;;  %543 = vperm.xlu1 %1287, %v533_v36  }
  0xfa   : > { %781 = vperm.xlu0 %1286, %v1138_v37   ;;  %796 = vperm.xlu1 %1287, %v1141_v38  }
  0xfe   : > { %786 = vperm.xlu1 %1287, %v1139_v39  }
 0x150   : > { %v481_v45 = vpop.permute.xlu0 %480 }
 0x151   : > { %v491_v47 = vsel %vm488_vm1, 0.0, %v481_v45 }
 0x152   : > { %v495_v55 = vadd.f32 %v491_v47, %v466_v48 }
 0x154   : > { %v506_v49 = vpop.permute.xlu0 %505  ;;  %v483_v50 = vpop.permute.xlu1 %482 }
 0x155   : > { %v516_v52 = vsel %vm513_vm2, %v506_v49, 0.0  ;;  %v492_v53 = vsel %vm488_vm1, 0.0, %v483_v50 }
 0x156   : > { %v520_v56 = vadd.f32 %v516_v52, %v495_v55  ;;  %v496_v57 = vadd.f32 %v492_v53, %v469_v54  ;;  %v1302_v54 = vld [vmem:[%s1556_s3 + $0x10] sm:$0xff]   ;;  %v1150_v55 = vld [vmem:[%s1557_s4 + $0x20] sm:$0xff] }
 0x158   : > { %v477_v58 = vpop.permute.xlu0 %476  ;;  %v508_v59 = vpop.permute.xlu1 %507  ;;  %v524_v1 = vmax.f32 %v520_v56, 0.0 }
 0x159   : > { %v517_v60 = vsel %vm513_vm2, %v508_v59, 0.0  ;;  %v489_v63 = vsel %vm488_vm1, 0.0, %v477_v58  ;;  %v1151_v58 = vld [vmem:[%s1557_s4 + $0x28] sm:$0xff]  ;;  %v1153_v59 = vld [vmem:[%s1557_s4 + $0x38] sm:$0xff] }
 0x15a   : > { %v521_v61 = vadd.f32 %v517_v60, %v496_v57  ;;  %v493_v14 = vadd.f32 %v489_v63, %v458_v0  ;;  %v1152_v57 = vld [vmem:[%s1557_s4 + $0x30] sm:$0xff] }
 0x15c   : > { %v525_v2 = vmax.f32 %v521_v61, 0.0  ;;  %v502_v5 = vpop.permute.xlu0 %501  ;;  %v479_v10 = vpop.permute.xlu1 %478 }
 0x15d   : > { %v514_v11 = vsel %vm513_vm2, %v502_v5, 0.0  ;;  %v490_v12 = vsel %vm488_vm1, 0.0, %v479_v10 }
 0x15e   : > { %v527_v15 = vpack.c.bf16 %v525_v2, %v524_v1  ;;  %v518_v16 = vadd.f32 %v514_v11, %v493_v14  ;;  %v494_v17 = vadd.f32 %v490_v12, %v461_v13 }
 0x160   : > { %v504_v18 = vpop.permute.xlu1 %503  ;;  %1235 = vmatprep.subr.bf16.mxu1 %v527_v15  ;;  %v522_v21 = vmax.f32 %v518_v16, 0.0 }
 0x161   : > { %v515_v19 = vsel %vm513_vm2, %v504_v18, 0.0  ;;  %1236 = vmatpush3.bf16.msra.mxu1 %v527_v15 }
 0x162   : > { %v519_v20 = vadd.f32 %v515_v19, %v494_v17 }
 0x164   : > { %v523_v22 = vmax.f32 %v519_v20, 0.0 }
 0x166   : > { %v526_v23 = vpack.c.bf16 %v523_v22, %v522_v21 }
 0x168   : > { %1237 = vmatprep.subr.bf16.mxu1 %v526_v23 }
 0x169   : > { %1238 = vmatpush3.bf16.msra.mxu1 %v526_v23  ;;  %v549_v27 = vpop.permute.xlu0 %548 }
 0x16c   : > { %1240 = vmatmul.mubr.msk.bf16.vlgmr.msra.gmra.mxu1 %vm262_vm0, %v1295_v24 }
 0x16d   : > { %1255 = vmatprep.mubr.msk.bf16.mxu1 %vm262_vm0, %v1297_v26  ;;  %v554_v28 = vpop.permute.xlu1 %553  ;;  %v539_v31 = vpop.permute.xlu0 %538 }
 0x171   : > { %v544_v37 = vpop.permute.xlu1 %543  ;;  %v792_v60 = vpop.permute.xlu0 %791 }
 0x175   : > { %v797_v61 = vpop.permute.xlu1 %796  ;;  %v782_v63 = vpop.permute.xlu0 %781 }
 0x179   : > { %v787_v1 = vpop.permute.xlu1 %786 }
 0x22c   : > { %v1241_v29 = vpop.f32.mrf.mxu1 }
 0x22d   : > { %v615_v30 = vadd.f32 %v1241_v29, %v549_v27 }
 0x22e   : > { %v606_v32 = vpop.f32.mrf.mxu1 }
 0x22f   : > { %v607_v33 = vadd.f32 %v606_v32, %v539_v31  ;;  %v1471_v35 = vadd.f32 %v1176_v6, %v615_v30 }
 0x230   : > { %v1242_v34 = vpop.f32.mrf.mxu1 }
 0x231   : > { %v618_v36 = vadd.f32 %v1242_v34, %v554_v28  ;;  %v1475_v39 = vadd.f32 %v1172_v8, %v607_v33  ;;  %v627_v42 = vmax.f32 %v1471_v35, 0.0 }
 0x232   : > { %v609_v38 = vpop.f32.mrf.mxu1 }
 0x233   : > { %v1479_v40 = vadd.f32 %v1177_v7, %v618_v36  ;;  %v610_v41 = vadd.f32 %v609_v38, %v544_v37  ;;  %v625_v44 = vmax.f32 %v1475_v39, 0.0  ;;  %v1300_v7 = vld [vmem:[%s1554_s1 + $0x40] sm:$0xff]  }
 0x235   : > { %v628_v43 = vmax.f32 %v1479_v40, 0.0  ;;  %v1485_v6 = vadd.f32 %v1173_v9, %v610_v41  ;;  %v1301_v9 = vld [vmem:[%s1554_s1 + $0x48] sm:$0xff]  }
 0x237   : > { %v630_v45 = vpack.c.bf16 %v628_v43, %v627_v42  ;;  %v626_v46 = vmax.f32 %v1485_v6, 0.0 }
 0x239   : > { %v629_v8 = vpack.c.bf16 %v626_v46, %v625_v44  ;;  %1243 = vmatprep.subr.bf16.mxu0 %v630_v45  ;;  %1251 = vmatprep.subr.bf16.mxu1 %v630_v45 }
 0x23a   : > { %1244 = vmatpush3.bf16.msra.mxu0 %v630_v45  ;;  %1252 = vmatpush3.bf16.msra.mxu1 %v630_v45 }
 0x23b   : > { %1245 = vmatprep.subr.bf16.mxu0 %v629_v8  ;;  %1253 = vmatprep.subr.bf16.mxu1 %v629_v8 }
 0x23e   : > { %1246 = vmatpush3.bf16.msra.mxu0 %v629_v8  ;;  %1254 = vmatpush3.bf16.msra.mxu1 %v629_v8 }
 0x23f   : > { %1259 = vmatprep.subr.bf16.mxu0 %v630_v45 }
 0x241   : > { %1248 = vmatmul.mubr.msk.bf16.vlgmr.msra.gmra.mxu0 %vm262_vm0, %v1298_v3  ;;  %1256 = vmatmul.mubr.msk.bf16.vlgmr.msra.gmra.mxu1 %vm262_vm0, %v1299_v4 }
 0x242   : > { %1260 = vmatpush3.bf16.msra.mxu0 %v630_v45  ;;  %1263 = vmatprep.mubr.msk.bf16.mxu0 %vm262_vm0, %v1300_v7 }
 0x243   : > { %1261 = vmatprep.subr.bf16.mxu0 %v629_v8  ;;  %1271 = vmatprep.mubr.msk.bf16.mxu1 %vm262_vm0, %v1302_v54 }
 0x246   : > { %1262 = vmatpush3.bf16.msra.mxu0 %v629_v8  ;;  %v1303_v8 = vld [vmem:[%s1556_s3 + $0x18] sm:$0xff]  }
 0x249   : > { %1264 = vmatmul.mubr.msk.bf16.vlgmr.msra.gmra.mxu0 %vm262_vm0, %v1301_v9 }
 0x301   : > { %v1249_v47 = vpop.f32.mrf.mxu0  ;;  %v1257_v48 = vpop.f32.mrf.mxu1 }
 0x302   : > { %872 = vrot.lane.b32.xlu0 %v1249_v47, %s1313_s21 }
 0x303   : > { %v694_v49 = vpop.f32.mrf.mxu0  ;;  %v759_v50 = vpop.f32.mrf.mxu1 }
 0x305   : > { %v1250_v51 = vpop.f32.mrf.mxu0  ;;  %v1258_v52 = vpop.f32.mrf.mxu1 }
 0x306   : > { %896 = vrot.lane.b32.xlu0 %v1257_v48, %s1314_s22  ;;  %874 = vrot.lane.b32.xlu1 %v1250_v51, %s1313_s21 }
 0x307   : > { %v697_v53 = vpop.f32.mrf.mxu0  ;;  %v762_v56 = vpop.f32.mrf.mxu1 }
 0x309   : > { %v1265_v62 = vpop.f32.mrf.mxu0 }
 0x30a   : > { %868 = vrot.lane.b32.xlu0 %v694_v49, %s1313_s21  ;;  %898 = vrot.lane.b32.xlu1 %v1258_v52, %s1314_s22  ;;  %v858_v11 = vadd.f32 %v1265_v62, %v792_v60 }
 0x30b   : > { %v849_v0 = vpop.f32.mrf.mxu0 }
 0x30c   : > { %v850_v26 = vadd.f32 %v849_v0, %v782_v63 }
 0x30d   : > { %v1266_v5 = vpop.f32.mrf.mxu0 }
 0x30e   : > { %892 = vrot.lane.b32.xlu0 %v759_v50, %s1314_s22  ;;  %870 = vrot.lane.b32.xlu1 %v697_v53, %s1313_s21  ;;  %v861_v16 = vadd.f32 %v1266_v5, %v797_v61 }
 0x30f   : > { %v852_v24 = vpop.f32.mrf.mxu0 }
 0x310   : > { %v853_v33 = vadd.f32 %v852_v24, %v787_v1 }
 0x312   : > { %930 = vperm.xlu0 %1286, %v1150_v55   ;;  %894 = vrot.lane.b32.xlu1 %v762_v56, %s1314_s22 }
 0x316   : > { %940 = vperm.xlu0 %1286, %v1152_v57   ;;  %935 = vperm.xlu1 %1287, %v1151_v58  }
 0x31a   : > { %945 = vperm.xlu1 %1287, %v1153_v59  }
 0x374   : > { %v873_v2 = vpop.permute.xlu0 %872 }
 0x375   : > { %v882_v10 = vsel %vm488_vm1, 0.0, %v873_v2 }
 0x376   : > { %v886_v17 = vadd.f32 %v882_v10, %v858_v11 }
 0x378   : > { %v897_v12 = vpop.permute.xlu0 %896  ;;  %v875_v13 = vpop.permute.xlu1 %874 }
 0x379   : > { %v906_v14 = vsel %vm513_vm2, %v897_v12, 0.0  ;;  %v883_v15 = vsel %vm488_vm1, 0.0, %v875_v13 }
 0x37a   : > { %v910_v18 = vadd.f32 %v906_v14, %v886_v17  ;;  %v887_v19 = vadd.f32 %v883_v15, %v861_v16 }
 0x37c   : > { %v869_v20 = vpop.permute.xlu0 %868  ;;  %v899_v21 = vpop.permute.xlu1 %898  ;;  %v914_v27 = vmax.f32 %v910_v18, 0.0 }
 0x37d   : > { %v907_v22 = vsel %vm513_vm2, %v899_v21, 0.0  ;;  %v880_v25 = vsel %vm488_vm1, 0.0, %v869_v20 }
 0x37e   : > { %v911_v23 = vadd.f32 %v907_v22, %v887_v19  ;;  %v884_v34 = vadd.f32 %v880_v25, %v850_v26 }
 0x380   : > { %v915_v28 = vmax.f32 %v911_v23, 0.0  ;;  %v893_v29 = vpop.permute.xlu0 %892  ;;  %v871_v30 = vpop.permute.xlu1 %870 }
 0x381   : > { %v904_v31 = vsel %vm513_vm2, %v893_v29, 0.0  ;;  %v881_v32 = vsel %vm488_vm1, 0.0, %v871_v30 }
 0x382   : > { %v917_v36 = vpack.c.bf16 %v915_v28, %v914_v27  ;;  %v908_v37 = vadd.f32 %v904_v31, %v884_v34  ;;  %v885_v38 = vadd.f32 %v881_v32, %v853_v33 }
 0x384   : > { %v895_v41 = vpop.permute.xlu1 %894  ;;  %1267 = vmatprep.subr.bf16.mxu1 %v917_v36  ;;  %v912_v44 = vmax.f32 %v908_v37, 0.0 }
 0x385   : > { %v905_v42 = vsel %vm513_vm2, %v895_v41, 0.0  ;;  %1268 = vmatpush3.bf16.msra.mxu1 %v917_v36 }
 0x386   : > { %v909_v43 = vadd.f32 %v905_v42, %v885_v38 }
 0x388   : > { %v913_v45 = vmax.f32 %v909_v43, 0.0 }
 0x38a   : > { %v916_v46 = vpack.c.bf16 %v913_v45, %v912_v44 }
 0x38c   : > { %1269 = vmatprep.subr.bf16.mxu1 %v916_v46 }
 0x38d   : > { %1270 = vmatpush3.bf16.msra.mxu1 %v916_v46  ;;  %v931_v3 = vpop.permute.xlu0 %930 }
 0x390   : > { %1272 = vmatmul.mubr.msk.bf16.vlgmr.msra.gmra.mxu1 %vm262_vm0, %v1303_v8 }
 0x391   : > { %v936_v4 = vpop.permute.xlu1 %935  ;;  %v941_v7 = vpop.permute.xlu0 %940 }
 0x395   : > { %v946_v51 = vpop.permute.xlu1 %945 }
 0x450   : > { %v1273_v9 = vpop.f32.mrf.mxu1 }
 0x451   : > { %v1007_v47 = vadd.f32 %v1273_v9, %v941_v7 }
 0x452   : > { %v998_v48 = vpop.f32.mrf.mxu1 }
 0x453   : > { %v1015_v49 = vadd.f32 %v1007_v47, %v1471_v35  ;;  %v999_v50 = vadd.f32 %v998_v48, %v931_v3 }
 0x454   : > { %v1274_v52 = vpop.f32.mrf.mxu1 }
 0x455   : > { %v1168_v53 = vpack.c.bf16 %v1015_v49, %v1015_v49  ;;  %v1013_v54 = vadd.f32 %v999_v50, %v1475_v39  ;;  %v1010_v55 = vadd.f32 %v1274_v52, %v946_v51 }
 0x456   : > { %v1001_v56 = vpop.f32.mrf.mxu1 }
 0x457   : > { %1036 = vst.msk [vmem:[%s224_s28 + $0x8] sm:$0xf] %vm1033_vm3, %v1168_v53  ;;  %v1166_v57 = vpack.c.bf16 %v1013_v54, %v1013_v54  ;;  %v1016_v58 = vadd.f32 %v1010_v55, %v1479_v40  ;;  %v1002_v59 = vadd.f32 %v1001_v56, %v936_v4 }
 0x459   : > { %1034 = vst.msk [vmem:[%s224_s28] sm:$0xf] %vm1033_vm3, %v1166_v57  ;;  %v1169_v35 = vpack.c.bf16 %v1016_v58, %v1016_v58  ;;  %v1014_v60 = vadd.f32 %v1002_v59, %v1485_v6 }
 0x45b   : > { %1037 = vst.msk [vmem:[%s224_s28 + $0xc] sm:$0xf] %vm1033_vm3, %v1169_v35  ;;  %v1167_v61 = vpack.c.bf16 %v1014_v60, %v1014_v60 }
 0x45d   : > { %1035 = vst.msk [vmem:[%s224_s28 + $0x4] sm:$0xf] %vm1033_vm3, %v1167_v61 }
 0x45e PF: > { %s15_s18 = sadd.s32 1, %s1310_s18  }
 0x45f   : > { %p12_p4 = scmp.ge.s32.totalorder %s15_s18, 4  }
 0x461   :  { %14 = sbr.rel (!%p12_p4) target bundleno = 1 (0x1), region = 74 }

</bundles_post_ra>
